<compile_context>
chip_gen: v7x
topology: tpu7x:2x2x1
jax: 0.10.0
libtpu: 0.0.40
codegen_flags: <defaults>
</compile_context>

<pallas_src>
import math

import jax
import jax.numpy as jnp
from jax import lax
from jax.experimental import pallas as pl
from jax.experimental.pallas import tpu as pltpu


def _rwkv_attn_kernel(
    # ---- inputs ------------------------------------------------------------
    x_ref,      # (TU, BT, Dp)  time-major activation chunk, f32
    mk_ref,     # (1, Dp) time_mix_key
    mv_ref,     # (1, Dp) time_mix_value
    mr_ref,     # (1, Dp) time_mix_receptance
    wk_hbm,     # (Dp, Ap) proj_key weight, bf16, HBM (memory_space=ANY)
    bk_ref,     # (1, Ap)
    wv_hbm,     # (Dp, Ap) bf16, HBM
    bv_ref,     # (1, Ap)
    wr_hbm,     # (Dp, Ap) bf16, HBM
    br_ref,     # (1, Ap)
    td_ref,     # (1, Ap) time_decay
    tf_ref,     # (1, Ap) time_first
    wo_hbm,     # (Ap, Dp) bf16, HBM
    bo_ref,     # (1, Dp)
    # ---- outputs -----------------------------------------------------------
    o_ref,      # (TU, BT, Dp) f32
    # ---- scratch -----------------------------------------------------------
    wk_v, wv_v, wr_v,      # VMEM (Dp, Ap) bf16, single-buffered weights
    wo_v,                  # VMEM (Ap, Dp) bf16
    wsem,                  # DMA semaphores (4,)
    k_s,                   # VMEM (TU*BT, Ap) f32: k, then wkv (aliased)
    v_s,                   # VMEM (TU*BT, Ap) f32
    num_s, den_s, max_s,   # VMEM (BT, Ap) f32  carried WKV state
    xlast_s,               # VMEM (BT, Dp) f32  carried previous time row
):
    t = pl.program_id(1)
    TU, BT, Dp = x_ref.shape
    Ap = wk_v.shape[1]
    M = TU * BT

    # -- once per batch tile (t == 0): single-buffered weight load + state init
    @pl.when(t == 0)
    def _():
        copies = (
            pltpu.make_async_copy(wk_hbm, wk_v, wsem.at[0]),
            pltpu.make_async_copy(wv_hbm, wv_v, wsem.at[1]),
            pltpu.make_async_copy(wr_hbm, wr_v, wsem.at[2]),
            pltpu.make_async_copy(wo_hbm, wo_v, wsem.at[3]),
        )
        for c in copies:
            c.start()
        for c in copies:
            c.wait()
        xlast_s[...] = jnp.zeros_like(xlast_s)
        num_s[...] = jnp.zeros_like(num_s)
        den_s[...] = jnp.zeros_like(den_s)
        max_s[...] = jnp.full_like(max_s, -1e38)

    def shifted_x():
        """x chunk and its time-shifted version (row 0 comes from the carry)."""
        x3 = x_ref[...].astype(jnp.float32)                       # (TU, BT, Dp)
        rolled = pltpu.roll(x3.reshape(M, Dp), shift=BT, axis=0)
        rolled = rolled.reshape(TU, BT, Dp)
        row = lax.broadcasted_iota(jnp.int32, (M, Dp), 0).reshape(TU, BT, Dp)
        prev = jnp.broadcast_to(xlast_s[...].reshape(1, BT, Dp), (TU, BT, Dp))
        return x3, jnp.where(row < BT, prev, rolled)

    # -- time-mix + key/value projections for this chunk (bf16 MXU, f32 acc) --
    x3, sh = shifted_x()
    dx = x3 - sh
    k_in = (sh + dx * mk_ref[...]).reshape(M, Dp)
    v_in = (sh + dx * mv_ref[...]).reshape(M, Dp)
    k_s[...] = (
        jnp.dot(k_in.astype(jnp.bfloat16), wk_v[...],
                preferred_element_type=jnp.float32) + bk_ref[...]
    )
    v_s[...] = (
        jnp.dot(v_in.astype(jnp.bfloat16), wv_v[...],
                preferred_element_type=jnp.float32) + bv_ref[...]
    )

    # -- WKV recurrence over the chunk's time steps ---------------------------
    # Channels are independent: strip-mine A so the (num, den, max) carry stays
    # register-resident.  wkv overwrites k in place (write-after-read within an
    # iteration), halving the slab count; the divide uses the EUP approximate
    # reciprocal + one Newton step (one vector store per step).
    w_row = -jnp.exp(td_ref[...])                                 # (1, Ap)
    u_row = tf_ref[...]                                           # (1, Ap)
    AC = min(Ap, 1024)
    for a0 in range(0, Ap, AC):
        ac = min(AC, Ap - a0)
        unroll = max(1, min(TU, 1024 // ac))                      # adaptive in A
        w_b = jnp.broadcast_to(w_row[:, a0:a0 + ac], (BT, ac))
        u_b = jnp.broadcast_to(u_row[:, a0:a0 + ac], (BT, ac))

        def body(i, carry):
            num, den, mx = carry                                  # (BT, ac) f32
            off = pl.multiple_of(i * BT, BT)
            kt = k_s[pl.ds(off, BT), pl.ds(a0, ac)]
            vt = v_s[pl.ds(off, BT), pl.ds(a0, ac)]
            uk = u_b + kt
            no = jnp.maximum(mx, uk)
            e1 = jnp.exp(mx - no)
            e2 = jnp.exp(uk - no)
            numer = e1 * num + e2 * vt
            denom = e1 * den + e2
            inv = pl.reciprocal(denom, approx=True)
            inv = inv * (2.0 - denom * inv)          # one Newton step (~exact)
            k_s[pl.ds(off, BT), pl.ds(a0, ac)] = numer * inv      # wkv (aliased)
            mw = mx + w_b
            no2 = jnp.maximum(mw, kt)
            f1 = jnp.exp(mw - no2)
            f2 = jnp.exp(kt - no2)
            return (f1 * num + f2 * vt, f1 * den + f2, no2)

        carry0 = (
            num_s[:, pl.ds(a0, ac)],
            den_s[:, pl.ds(a0, ac)],
            max_s[:, pl.ds(a0, ac)],
        )
        numf, denf, maxf = lax.fori_loop(0, TU, body, carry0, unroll=unroll)
        num_s[:, pl.ds(a0, ac)] = numf
        den_s[:, pl.ds(a0, ac)] = denf
        max_s[:, pl.ds(a0, ac)] = maxf

    # -- receptance + output projection (r computed after the loop so nothing
    #    (M, Ap)-sized is live across the recurrence) -------------------------
    x3, sh = shifted_x()
    r_in = (sh + (x3 - sh) * mr_ref[...]).reshape(M, Dp)
    xlast_s[...] = x3[TU - 1]                       # advance time-shift carry
    r = jax.nn.sigmoid(
        jnp.dot(r_in.astype(jnp.bfloat16), wr_v[...],
                preferred_element_type=jnp.float32) + br_ref[...]
    )
    out = (
        jnp.dot((r * k_s[...]).astype(jnp.bfloat16), wo_v[...],
                preferred_element_type=jnp.float32) + bo_ref[...]
    )
    o_ref[...] = out.reshape(TU, BT, Dp).astype(o_ref.dtype)


def _round_up(n, m):
    return ((n + m - 1) // m) * m


def decoder_self_attention(x, p, *, batch_tile=8, max_time_chunk=64):
    """x: (B, U, size) f32.  p: dict of parameters (see init_params)."""
    B, U, D = x.shape
    A = p["wk"].shape[1]
    BT = batch_tile
    Dp = _round_up(D, 128)          # lane-dense channel dims
    Ap = _round_up(A, 128)
    Bp = _round_up(B, BT)           # batch fills sublanes of the recurrence

    f32, bf16 = jnp.float32, jnp.bfloat16
    weight_bytes = 4 * Dp * Ap * 2  # bf16, single-buffered in VMEM scratch

    # Generation-aware VMEM budget (v5e/v6e: 128 MiB, v7x: 64 MiB per core).
    try:
        vmem_cap = int(pltpu.get_tpu_info().vmem_capacity_bytes)
    except Exception:
        vmem_cap = 64 * 1024 * 1024
    budget = int(0.85 * vmem_cap)

    def _vmem_est(tu):
        rows = tu * BT
        return (
            2 * 2 * rows * Dp * 4              # double-buffered x + o blocks
            + weight_bytes                     # single-buffered weights
            + 2 * rows * Ap * 4                # k/wkv + v slabs
            + (3 * BT * Ap + BT * Dp) * 4      # carried state + x_last
            + 4 * rows * max(Dp, Ap) * 4       # in-kernel temporaries
            + (1 << 20)
        )

    # Time-chunk size: VMEM-independent of U; shrink until it fits the budget.
    TU = max(1, min(max_time_chunk, U))
    while TU > 1 and _vmem_est(TU) > budget:
        TU = max(1, TU // 2)
    Upad = _round_up(U, TU)
    NT = Upad // TU

    # Pad + transpose activations to time-major (Upad, Bp, Dp).
    xp = jnp.pad(x.astype(f32), ((0, Bp - B), (0, Upad - U), (0, Dp - D)))
    x_tm = jnp.transpose(xp, (1, 0, 2))

    def pad2(a, r, c, dtype):
        return jnp.pad(a, ((0, r - a.shape[0]), (0, c - a.shape[1]))).astype(dtype)

    mk = pad2(p["mk"], 1, Dp, f32)
    mv = pad2(p["mv"], 1, Dp, f32)
    mr = pad2(p["mr"], 1, Dp, f32)
    wk = pad2(p["wk"], Dp, Ap, bf16)
    bk = pad2(p["bk"], 1, Ap, f32)
    wv = pad2(p["wv"], Dp, Ap, bf16)
    bv = pad2(p["bv"], 1, Ap, f32)
    wr = pad2(p["wr"], Dp, Ap, bf16)
    br = pad2(p["br"], 1, Ap, f32)
    td = pad2(p["td"], 1, Ap, f32)
    tf = pad2(p["tf"], 1, Ap, f32)
    wo = pad2(p["wo"], Ap, Dp, bf16)
    bo = pad2(p["bo"], 1, Dp, f32)

    grid = (Bp // BT, NT)

    full2 = lambda r, c: pl.BlockSpec((r, c), lambda b, t: (0, 0))
    hbm = pl.BlockSpec(memory_space=pl.ANY)
    in_specs = [
        pl.BlockSpec((TU, BT, Dp), lambda b, t: (t, b, 0)),      # x (time-major)
        full2(1, Dp), full2(1, Dp), full2(1, Dp),                # mk, mv, mr
        hbm, full2(1, Ap),                                       # wk, bk
        hbm, full2(1, Ap),                                       # wv, bv
        hbm, full2(1, Ap),                                       # wr, br
        full2(1, Ap), full2(1, Ap),                              # td, tf
        hbm, full2(1, Dp),                                       # wo, bo
    ]
    out_spec = pl.BlockSpec((TU, BT, Dp), lambda b, t: (t, b, 0))

    scratch_shapes = [
        pltpu.VMEM((Dp, Ap), bf16),       # wk (single-buffered)
        pltpu.VMEM((Dp, Ap), bf16),       # wv
        pltpu.VMEM((Dp, Ap), bf16),       # wr
        pltpu.VMEM((Ap, Dp), bf16),       # wo
        pltpu.SemaphoreType.DMA((4,)),    # weight-copy semaphores
        pltpu.VMEM((TU * BT, Ap), f32),   # k, then wkv
        pltpu.VMEM((TU * BT, Ap), f32),   # v
        pltpu.VMEM((BT, Ap), f32),        # num state
        pltpu.VMEM((BT, Ap), f32),        # den state
        pltpu.VMEM((BT, Ap), f32),        # max state
        pltpu.VMEM((BT, Dp), f32),        # x_last carry
    ]

    vmem_limit = min(max(2 * _vmem_est(TU), 32 * 1024 * 1024), budget)

    m_total = Bp * Upad
    cost = pl.CostEstimate(
        flops=int(2 * m_total * 4 * Dp * Ap),
        transcendentals=int(m_total * Ap * 6),
        bytes_accessed=int(2 * m_total * Dp * 4 + weight_bytes * (Bp // BT)),
    )

    out_tm = pl.pallas_call(
        _rwkv_attn_kernel,
        out_shape=jax.ShapeDtypeStruct((Upad, Bp, Dp), jnp.float32),
        grid_spec=pltpu.PrefetchScalarGridSpec(
            num_scalar_prefetch=0,
            grid=grid,
            in_specs=in_specs,
            out_specs=out_spec,
            scratch_shapes=scratch_shapes,
        ),
        compiler_params=pltpu.CompilerParams(
            dimension_semantics=("parallel", "arbitrary"),
            vmem_limit_bytes=int(vmem_limit),
        ),
        cost_estimate=cost,
    )(
        x_tm,
        mk, mv, mr,
        wk, bk, wv, bv, wr, br,
        td, tf, wo, bo,
    )

    # back to (B, U, size), strip padding
    return jnp.transpose(out_tm, (1, 0, 2))[:B, :U, :D]


def init_params(key, size, attention_size, block_id, num_blocks):
    """Deterministic parameter init mirroring SelfAttention.reset_parameters."""
    ratio_0_to_1 = block_id / (num_blocks - 1)
    ratio_1_to_almost0 = 1.0 - block_id / num_blocks

    i = jnp.arange(size, dtype=jnp.float32)
    time_weight = i / size                                        # (size,)
    h = jnp.arange(attention_size, dtype=jnp.float32)
    decay_speed = -5.0 + 8.0 * (h / (attention_size - 1)) ** (0.7 + 1.3 * ratio_0_to_1)

    mk = (time_weight ** ratio_1_to_almost0).reshape(1, size)
    mv = (time_weight ** ratio_1_to_almost0 + 0.3 * ratio_0_to_1).reshape(1, size)
    mr = (time_weight ** (0.5 * ratio_1_to_almost0)).reshape(1, size)
    td = decay_speed.reshape(1, attention_size)
    tf = jnp.ones((1, attention_size), jnp.float32)               # torch.ones_like(...)

    ks = jax.random.split(key, 8)

    def linear(kw, kb, fan_in, fan_out):
        bound = 1.0 / math.sqrt(fan_in)
        w = jax.random.uniform(kw, (fan_in, fan_out), jnp.float32, -bound, bound)
        b = jax.random.uniform(kb, (1, fan_out), jnp.float32, -bound, bound)
        return w, b

    wk, bk = linear(ks[0], ks[1], size, attention_size)
    wv, bv = linear(ks[2], ks[3], size, attention_size)
    wr, br = linear(ks[4], ks[5], size, attention_size)
    wo, bo = linear(ks[6], ks[7], attention_size, size)

    return dict(mk=mk, mv=mv, mr=mr, wk=wk, bk=bk, wv=wv, bv=bv,
                wr=wr, br=br, td=td, tf=tf, wo=wo, bo=bo)


def ref_forward(x, p):
    """Pure-JAX reference of the PyTorch forward (state=None, eval mode).

    Matmul operands are cast to bf16 with f32 accumulation to mirror the
    kernel's MXU precision; all other math is f32.
    """
    B, U, D = x.shape
    bf16 = jnp.bfloat16
    shifted = jnp.concatenate([jnp.zeros((B, 1, D), x.dtype), x[:, :-1]], axis=1)
    dx = x - shifted

    def proj(inp, w, b):
        y = jnp.dot(inp.reshape(-1, inp.shape[-1]).astype(bf16), w.astype(bf16),
                    preferred_element_type=jnp.float32)
        return y.reshape(inp.shape[:-1] + (w.shape[1],)) + b

    k = proj(shifted + dx * p["mk"], p["wk"], p["bk"])
    v = proj(shifted + dx * p["mv"], p["wv"], p["bv"])
    r = jax.nn.sigmoid(proj(shifted + dx * p["mr"], p["wr"], p["br"]))

    w = -jnp.exp(p["td"][0])
    u = p["tf"][0]
    A = w.shape[0]

    def step(carry, kv):
        num, den, mx = carry
        kt, vt = kv
        no = jnp.maximum(mx, u + kt)
        e1, e2 = jnp.exp(mx - no), jnp.exp(u + kt - no)
        wkv = (e1 * num + e2 * vt) / (e1 * den + e2)
        no2 = jnp.maximum(mx + w, kt)
        e1, e2 = jnp.exp(mx + w - no2), jnp.exp(kt - no2)
        return (e1 * num + e2 * vt, e1 * den + e2, no2), wkv

    init = (jnp.zeros((B, A)), jnp.zeros((B, A)), jnp.full((B, A), -1e38))
    _, wkv = lax.scan(step, init, (jnp.swapaxes(k, 0, 1), jnp.swapaxes(v, 0, 1)))
    wkv = jnp.swapaxes(wkv, 0, 1)                                 # (B, U, A)
    return proj(r * wkv, p["wo"], p["bo"])


if __name__ == "__main__":
    key = jax.random.PRNGKey(0)

    # --- small single-chunk case --------------------------------------------
    B, U, SIZE, ATT = 2, 8, 32, 32
    BLOCK_ID, NUM_BLOCKS = 1, 4
    kx, kp, kx2, kp2 = jax.random.split(key, 4)
    x = jax.random.normal(kx, (B, U, SIZE), jnp.float32)
    params = init_params(kp, SIZE, ATT, BLOCK_ID, NUM_BLOCKS)

    out = jax.block_until_ready(decoder_self_attention(x, params))
    ref = ref_forward(x, params)
    assert out.shape == (B, U, SIZE)
    assert jnp.allclose(out, ref, atol=3e-3, rtol=3e-3), "mismatch vs reference"

    # --- multi-chunk / multi-batch-tile case (exercises the carried state) ---
    B2, U2, SIZE2, ATT2 = 9, 20, 48, 40
    x2 = jax.random.normal(kx2, (B2, U2, SIZE2), jnp.float32)
    params2 = init_params(kp2, SIZE2, ATT2, 2, NUM_BLOCKS)

    out2 = jax.block_until_ready(
        decoder_self_attention(x2, params2, max_time_chunk=8))
    ref2 = ref_forward(x2, params2)
    assert out2.shape == (B2, U2, SIZE2)
    assert jnp.allclose(out2, ref2, atol=3e-3, rtol=3e-3), "mismatch vs reference (chunked)"

    print("KERNEL_OK")
</pallas_src>

<mosaic_0001>
module attributes {stable_mosaic.version = 11 : i64} {
  func.func @_rwkv_attn_kernel(%arg0: i32, %arg1: i32, %arg2: memref<8x8x128xf32, #tpu.memory_space<vmem>>, %arg3: memref<1x128xf32, #tpu.memory_space<vmem>>, %arg4: memref<1x128xf32, #tpu.memory_space<vmem>>, %arg5: memref<1x128xf32, #tpu.memory_space<vmem>>, %arg6: memref<128x128xbf16, #tpu.memory_space<any>>, %arg7: memref<1x128xf32, #tpu.memory_space<vmem>>, %arg8: memref<128x128xbf16, #tpu.memory_space<any>>, %arg9: memref<1x128xf32, #tpu.memory_space<vmem>>, %arg10: memref<128x128xbf16, #tpu.memory_space<any>>, %arg11: memref<1x128xf32, #tpu.memory_space<vmem>>, %arg12: memref<1x128xf32, #tpu.memory_space<vmem>>, %arg13: memref<1x128xf32, #tpu.memory_space<vmem>>, %arg14: memref<128x128xbf16, #tpu.memory_space<any>>, %arg15: memref<1x128xf32, #tpu.memory_space<vmem>>, %arg16: memref<8x8x128xf32, #tpu.memory_space<vmem>>, %arg17: memref<128x128xbf16, #tpu.memory_space<vmem>>, %arg18: memref<128x128xbf16, #tpu.memory_space<vmem>>, %arg19: memref<128x128xbf16, #tpu.memory_space<vmem>>, %arg20: memref<128x128xbf16, #tpu.memory_space<vmem>>, %arg21: memref<4x!tpu.dma_semaphore, #tpu.memory_space<semaphore_mem>>, %arg22: memref<64x128xf32, #tpu.memory_space<vmem>>, %arg23: memref<64x128xf32, #tpu.memory_space<vmem>>, %arg24: memref<8x128xf32, #tpu.memory_space<vmem>>, %arg25: memref<8x128xf32, #tpu.memory_space<vmem>>, %arg26: memref<8x128xf32, #tpu.memory_space<vmem>>, %arg27: memref<8x128xf32, #tpu.memory_space<vmem>>) attributes {dimension_semantics = [#tpu.dimension_semantics<parallel>, #tpu.dimension_semantics<arbitrary>], iteration_bounds = array<i64: 1, 1>, scalar_prefetch = 0 : i64, scratch_operands = 11 : i64, tpu.core_type = #tpu.core_type<tc>, window_params = [{transform_indices = @transform_0, window_bounds = array<i64: 8, 8, 128>}, {pipeline_mode = #tpu.pipeline_mode<synchronous>, transform_indices = @transform_1, window_bounds = array<i64: 1, 128>}, {pipeline_mode = #tpu.pipeline_mode<synchronous>, transform_indices = @transform_2, window_bounds = array<i64: 1, 128>}, {pipeline_mode = #tpu.pipeline_mode<synchronous>, transform_indices = @transform_3, window_bounds = array<i64: 1, 128>}, {}, {pipeline_mode = #tpu.pipeline_mode<synchronous>, transform_indices = @transform_5, window_bounds = array<i64: 1, 128>}, {}, {pipeline_mode = #tpu.pipeline_mode<synchronous>, transform_indices = @transform_7, window_bounds = array<i64: 1, 128>}, {}, {pipeline_mode = #tpu.pipeline_mode<synchronous>, transform_indices = @transform_9, window_bounds = array<i64: 1, 128>}, {pipeline_mode = #tpu.pipeline_mode<synchronous>, transform_indices = @transform_10, window_bounds = array<i64: 1, 128>}, {pipeline_mode = #tpu.pipeline_mode<synchronous>, transform_indices = @transform_11, window_bounds = array<i64: 1, 128>}, {}, {pipeline_mode = #tpu.pipeline_mode<synchronous>, transform_indices = @transform_13, window_bounds = array<i64: 1, 128>}, {transform_indices = @transform_14, window_bounds = array<i64: 8, 8, 128>}]} {
    %c0_i32 = arith.constant 0 : i32
    %0 = arith.cmpi eq, %arg1, %c0_i32 : i32
    %1 = arith.extui %0 : i1 to i32
    %c0_i32_0 = arith.constant 0 : i32
    %2 = arith.cmpi ne, %1, %c0_i32_0 : i32
    scf.if %2 {
      %c0_i32_109 = arith.constant 0 : i32
      %390 = tpu.memref_slice %arg21[%c0_i32_109] : memref<4x!tpu.dma_semaphore, #tpu.memory_space<semaphore_mem>> -> memref<1x!tpu.dma_semaphore, #tpu.memory_space<semaphore_mem>>
      %391 = tpu.memref_squeeze %390 : memref<1x!tpu.dma_semaphore, #tpu.memory_space<semaphore_mem>> -> memref<!tpu.dma_semaphore, #tpu.memory_space<semaphore_mem>>
      tpu.enqueue_dma source(%arg6 : memref<128x128xbf16, #tpu.memory_space<any>>) target(%arg17 : memref<128x128xbf16, #tpu.memory_space<vmem>>) target_semaphore(%391 : memref<!tpu.dma_semaphore, #tpu.memory_space<semaphore_mem>>)
      %c1_i32_110 = arith.constant 1 : i32
      %392 = tpu.memref_slice %arg21[%c1_i32_110] : memref<4x!tpu.dma_semaphore, #tpu.memory_space<semaphore_mem>> -> memref<1x!tpu.dma_semaphore, #tpu.memory_space<semaphore_mem>>
      %393 = tpu.memref_squeeze %392 : memref<1x!tpu.dma_semaphore, #tpu.memory_space<semaphore_mem>> -> memref<!tpu.dma_semaphore, #tpu.memory_space<semaphore_mem>>
      tpu.enqueue_dma source(%arg8 : memref<128x128xbf16, #tpu.memory_space<any>>) target(%arg18 : memref<128x128xbf16, #tpu.memory_space<vmem>>) target_semaphore(%393 : memref<!tpu.dma_semaphore, #tpu.memory_space<semaphore_mem>>)
      %c2_i32_111 = arith.constant 2 : i32
      %394 = tpu.memref_slice %arg21[%c2_i32_111] : memref<4x!tpu.dma_semaphore, #tpu.memory_space<semaphore_mem>> -> memref<1x!tpu.dma_semaphore, #tpu.memory_space<semaphore_mem>>
      %395 = tpu.memref_squeeze %394 : memref<1x!tpu.dma_semaphore, #tpu.memory_space<semaphore_mem>> -> memref<!tpu.dma_semaphore, #tpu.memory_space<semaphore_mem>>
      tpu.enqueue_dma source(%arg10 : memref<128x128xbf16, #tpu.memory_space<any>>) target(%arg19 : memref<128x128xbf16, #tpu.memory_space<vmem>>) target_semaphore(%395 : memref<!tpu.dma_semaphore, #tpu.memory_space<semaphore_mem>>)
      %c3_i32_112 = arith.constant 3 : i32
      %396 = tpu.memref_slice %arg21[%c3_i32_112] : memref<4x!tpu.dma_semaphore, #tpu.memory_space<semaphore_mem>> -> memref<1x!tpu.dma_semaphore, #tpu.memory_space<semaphore_mem>>
      %397 = tpu.memref_squeeze %396 : memref<1x!tpu.dma_semaphore, #tpu.memory_space<semaphore_mem>> -> memref<!tpu.dma_semaphore, #tpu.memory_space<semaphore_mem>>
      tpu.enqueue_dma source(%arg14 : memref<128x128xbf16, #tpu.memory_space<any>>) target(%arg20 : memref<128x128xbf16, #tpu.memory_space<vmem>>) target_semaphore(%397 : memref<!tpu.dma_semaphore, #tpu.memory_space<semaphore_mem>>)
      %c0_i32_113 = arith.constant 0 : i32
      %398 = tpu.memref_slice %arg21[%c0_i32_113] : memref<4x!tpu.dma_semaphore, #tpu.memory_space<semaphore_mem>> -> memref<1x!tpu.dma_semaphore, #tpu.memory_space<semaphore_mem>>
      %399 = tpu.memref_squeeze %398 : memref<1x!tpu.dma_semaphore, #tpu.memory_space<semaphore_mem>> -> memref<!tpu.dma_semaphore, #tpu.memory_space<semaphore_mem>>
      tpu.wait_dma2 semaphore(%399 : memref<!tpu.dma_semaphore, #tpu.memory_space<semaphore_mem>>) src(%arg6 : memref<128x128xbf16, #tpu.memory_space<any>>) dst(%arg17 : memref<128x128xbf16, #tpu.memory_space<vmem>>)
      %c1_i32_114 = arith.constant 1 : i32
      %400 = tpu.memref_slice %arg21[%c1_i32_114] : memref<4x!tpu.dma_semaphore, #tpu.memory_space<semaphore_mem>> -> memref<1x!tpu.dma_semaphore, #tpu.memory_space<semaphore_mem>>
      %401 = tpu.memref_squeeze %400 : memref<1x!tpu.dma_semaphore, #tpu.memory_space<semaphore_mem>> -> memref<!tpu.dma_semaphore, #tpu.memory_space<semaphore_mem>>
      tpu.wait_dma2 semaphore(%401 : memref<!tpu.dma_semaphore, #tpu.memory_space<semaphore_mem>>) src(%arg8 : memref<128x128xbf16, #tpu.memory_space<any>>) dst(%arg18 : memref<128x128xbf16, #tpu.memory_space<vmem>>)
      %c2_i32_115 = arith.constant 2 : i32
      %402 = tpu.memref_slice %arg21[%c2_i32_115] : memref<4x!tpu.dma_semaphore, #tpu.memory_space<semaphore_mem>> -> memref<1x!tpu.dma_semaphore, #tpu.memory_space<semaphore_mem>>
      %403 = tpu.memref_squeeze %402 : memref<1x!tpu.dma_semaphore, #tpu.memory_space<semaphore_mem>> -> memref<!tpu.dma_semaphore, #tpu.memory_space<semaphore_mem>>
      tpu.wait_dma2 semaphore(%403 : memref<!tpu.dma_semaphore, #tpu.memory_space<semaphore_mem>>) src(%arg10 : memref<128x128xbf16, #tpu.memory_space<any>>) dst(%arg19 : memref<128x128xbf16, #tpu.memory_space<vmem>>)
      %c3_i32_116 = arith.constant 3 : i32
      %404 = tpu.memref_slice %arg21[%c3_i32_116] : memref<4x!tpu.dma_semaphore, #tpu.memory_space<semaphore_mem>> -> memref<1x!tpu.dma_semaphore, #tpu.memory_space<semaphore_mem>>
      %405 = tpu.memref_squeeze %404 : memref<1x!tpu.dma_semaphore, #tpu.memory_space<semaphore_mem>> -> memref<!tpu.dma_semaphore, #tpu.memory_space<semaphore_mem>>
      tpu.wait_dma2 semaphore(%405 : memref<!tpu.dma_semaphore, #tpu.memory_space<semaphore_mem>>) src(%arg14 : memref<128x128xbf16, #tpu.memory_space<any>>) dst(%arg20 : memref<128x128xbf16, #tpu.memory_space<vmem>>)
      %cst_117 = arith.constant 0.000000e+00 : f32
      %406 = vector.broadcast %cst_117 : f32 to vector<8x128xf32>
      %c0_118 = arith.constant 0 : index
      %c0_119 = arith.constant 0 : index
      %407 = vector.load %arg27[%c0_118, %c0_119] : memref<8x128xf32, #tpu.memory_space<vmem>>, vector<8x128xf32>
      tpu.vector_store %arg27[%c0_118, %c0_119], %406 {strides = array<i32>} : memref<8x128xf32, #tpu.memory_space<vmem>>, vector<8x128xf32>,
      %cst_120 = arith.constant 0.000000e+00 : f32
      %408 = vector.broadcast %cst_120 : f32 to vector<8x128xf32>
      %c0_121 = arith.constant 0 : index
      %c0_122 = arith.constant 0 : index
      %409 = vector.load %arg24[%c0_121, %c0_122] : memref<8x128xf32, #tpu.memory_space<vmem>>, vector<8x128xf32>
      tpu.vector_store %arg24[%c0_121, %c0_122], %408 {strides = array<i32>} : memref<8x128xf32, #tpu.memory_space<vmem>>, vector<8x128xf32>,
      %cst_123 = arith.constant 0.000000e+00 : f32
      %410 = vector.broadcast %cst_123 : f32 to vector<8x128xf32>
      %c0_124 = arith.constant 0 : index
      %c0_125 = arith.constant 0 : index
      %411 = vector.load %arg25[%c0_124, %c0_125] : memref<8x128xf32, #tpu.memory_space<vmem>>, vector<8x128xf32>
      tpu.vector_store %arg25[%c0_124, %c0_125], %410 {strides = array<i32>} : memref<8x128xf32, #tpu.memory_space<vmem>>, vector<8x128xf32>,
      %cst_126 = arith.constant -9.99999968E+37 : f32
      %412 = vector.broadcast %cst_126 : f32 to vector<8x128xf32>
      %c0_127 = arith.constant 0 : index
      %c0_128 = arith.constant 0 : index
      %413 = vector.load %arg26[%c0_127, %c0_128] : memref<8x128xf32, #tpu.memory_space<vmem>>, vector<8x128xf32>
      tpu.vector_store %arg26[%c0_127, %c0_128], %412 {strides = array<i32>} : memref<8x128xf32, #tpu.memory_space<vmem>>, vector<8x128xf32>,
    } else {
    }
    %c0 = arith.constant 0 : index
    %c0_1 = arith.constant 0 : index
    %c0_2 = arith.constant 0 : index
    %3 = vector.load %arg2[%c0, %c0_1, %c0_2] : memref<8x8x128xf32, #tpu.memory_space<vmem>>, vector<8x8x128xf32>
    %4 = vector.shape_cast %3 : vector<8x8x128xf32> to vector<64x128xf32>
    %c8_i32 = arith.constant 8 : i32
    %5 = tpu.dynamic_rotate %4 by %c8_i32 dim 0 : vector<64x128xf32>, i32 -> vector<64x128xf32>
    %6 = vector.shape_cast %5 : vector<64x128xf32> to vector<8x8x128xf32>
    %7 = tpu.iota {dimensions = array<i32: 0>} : vector<64x128xi32>
    %8 = vector.shape_cast %7 : vector<64x128xi32> to vector<8x8x128xi32>
    %c0_3 = arith.constant 0 : index
    %c0_4 = arith.constant 0 : index
    %9 = vector.load %arg27[%c0_3, %c0_4] : memref<8x128xf32, #tpu.memory_space<vmem>>, vector<8x128xf32>
    %10 = vector.shape_cast %9 : vector<8x128xf32> to vector<1x8x128xf32>
    %11 = vector.shape_cast %10 : vector<1x8x128xf32> to vector<1x8x128xf32>
    %12 = vector.broadcast %11 : vector<1x8x128xf32> to vector<8x8x128xf32>
    %c8_i32_5 = arith.constant 8 : i32
    %13 = vector.broadcast %c8_i32_5 : i32 to vector<8x8x128xi32>
    %14 = arith.cmpi slt, %8, %13 : vector<8x8x128xi32>
    %15 = arith.select %14, %12, %6 : vector<8x8x128xi1>, vector<8x8x128xf32>
    %16 = arith.subf %3, %15 : vector<8x8x128xf32>
    %c0_6 = arith.constant 0 : index
    %c0_7 = arith.constant 0 : index
    %17 = vector.load %arg3[%c0_6, %c0_7] : memref<1x128xf32, #tpu.memory_space<vmem>>, vector<1x128xf32>
    %18 = vector.shape_cast %17 : vector<1x128xf32> to vector<1x1x128xf32>
    %19 = vector.broadcast %18 : vector<1x1x128xf32> to vector<8x8x128xf32>
    %20 = arith.mulf %16, %19 : vector<8x8x128xf32>
    %21 = arith.addf %15, %20 : vector<8x8x128xf32>
    %22 = vector.shape_cast %21 : vector<8x8x128xf32> to vector<64x128xf32>
    %c0_8 = arith.constant 0 : index
    %c0_9 = arith.constant 0 : index
    %23 = vector.load %arg4[%c0_8, %c0_9] : memref<1x128xf32, #tpu.memory_space<vmem>>, vector<1x128xf32>
    %24 = vector.shape_cast %23 : vector<1x128xf32> to vector<1x1x128xf32>
    %25 = vector.broadcast %24 : vector<1x1x128xf32> to vector<8x8x128xf32>
    %26 = arith.mulf %16, %25 : vector<8x8x128xf32>
    %27 = arith.addf %15, %26 : vector<8x8x128xf32>
    %28 = vector.shape_cast %27 : vector<8x8x128xf32> to vector<64x128xf32>
    %29 = arith.truncf %22 : vector<64x128xf32> to vector<64x128xbf16>
    %c0_10 = arith.constant 0 : index
    %c0_11 = arith.constant 0 : index
    %30 = vector.load %arg17[%c0_10, %c0_11] : memref<128x128xbf16, #tpu.memory_space<vmem>>, vector<128x128xbf16>
    %cst = arith.constant dense<0.000000e+00> : vector<64x128xf32>
    %31 = tpu.matmul %29, %30, %cst {dimension_numbers = #tpu.dot_dimension_numbers<[1], [0], [0], [1], [0, 0, 1, 1], [], []>} : vector<64x128xbf16>, vector<128x128xbf16>, vector<64x128xf32> -> vector<64x128xf32>
    %c0_12 = arith.constant 0 : index
    %c0_13 = arith.constant 0 : index
    %32 = vector.load %arg7[%c0_12, %c0_13] : memref<1x128xf32, #tpu.memory_space<vmem>>, vector<1x128xf32>
    %33 = vector.broadcast %32 : vector<1x128xf32> to vector<64x128xf32>
    %34 = arith.addf %31, %33 : vector<64x128xf32>
    %c0_14 = arith.constant 0 : index
    %c0_15 = arith.constant 0 : index
    %35 = vector.load %arg22[%c0_14, %c0_15] : memref<64x128xf32, #tpu.memory_space<vmem>>, vector<64x128xf32>
    tpu.vector_store %arg22[%c0_14, %c0_15], %34 {strides = array<i32>} : memref<64x128xf32, #tpu.memory_space<vmem>>, vector<64x128xf32>,
    %36 = arith.truncf %28 : vector<64x128xf32> to vector<64x128xbf16>
    %c0_16 = arith.constant 0 : index
    %c0_17 = arith.constant 0 : index
    %37 = vector.load %arg18[%c0_16, %c0_17] : memref<128x128xbf16, #tpu.memory_space<vmem>>, vector<128x128xbf16>
    %cst_18 = arith.constant dense<0.000000e+00> : vector<64x128xf32>
    %38 = tpu.matmul %36, %37, %cst_18 {dimension_numbers = #tpu.dot_dimension_numbers<[1], [0], [0], [1], [0, 0, 1, 1], [], []>} : vector<64x128xbf16>, vector<128x128xbf16>, vector<64x128xf32> -> vector<64x128xf32>
    %c0_19 = arith.constant 0 : index
    %c0_20 = arith.constant 0 : index
    %39 = vector.load %arg9[%c0_19, %c0_20] : memref<1x128xf32, #tpu.memory_space<vmem>>, vector<1x128xf32>
    %40 = vector.broadcast %39 : vector<1x128xf32> to vector<64x128xf32>
    %41 = arith.addf %38, %40 : vector<64x128xf32>
    %c0_21 = arith.constant 0 : index
    %c0_22 = arith.constant 0 : index
    %42 = vector.load %arg23[%c0_21, %c0_22] : memref<64x128xf32, #tpu.memory_space<vmem>>, vector<64x128xf32>
    tpu.vector_store %arg23[%c0_21, %c0_22], %41 {strides = array<i32>} : memref<64x128xf32, #tpu.memory_space<vmem>>, vector<64x128xf32>,
    %c0_23 = arith.constant 0 : index
    %c0_24 = arith.constant 0 : index
    %43 = vector.load %arg12[%c0_23, %c0_24] : memref<1x128xf32, #tpu.memory_space<vmem>>, vector<1x128xf32>
    %44 = math.exp %43 : vector<1x128xf32>
    %cst_25 = arith.constant 0.000000e+00 : f32
    %45 = vector.broadcast %cst_25 : f32 to vector<1x128xf32>
    %46 = arith.subf %45, %44 : vector<1x128xf32>
    %c0_26 = arith.constant 0 : index
    %c0_27 = arith.constant 0 : index
    %47 = vector.load %arg13[%c0_26, %c0_27] : memref<1x128xf32, #tpu.memory_space<vmem>>, vector<1x128xf32>
    %48 = vector.shape_cast %46 : vector<1x128xf32> to vector<1x128xf32>
    %49 = vector.broadcast %48 : vector<1x128xf32> to vector<8x128xf32>
    %50 = vector.shape_cast %47 : vector<1x128xf32> to vector<1x128xf32>
    %51 = vector.broadcast %50 : vector<1x128xf32> to vector<8x128xf32>
    %c0_28 = arith.constant 0 : index
    %c0_29 = arith.constant 0 : index
    %52 = vector.load %arg24[%c0_28, %c0_29] : memref<8x128xf32, #tpu.memory_space<vmem>>, vector<8x128xf32>
    %c0_30 = arith.constant 0 : index
    %c0_31 = arith.constant 0 : index
    %53 = vector.load %arg25[%c0_30, %c0_31] : memref<8x128xf32, #tpu.memory_space<vmem>>, vector<8x128xf32>
    %c0_32 = arith.constant 0 : index
    %c0_33 = arith.constant 0 : index
    %54 = vector.load %arg26[%c0_32, %c0_33] : memref<8x128xf32, #tpu.memory_space<vmem>>, vector<8x128xf32>
    %c0_i32_34 = arith.constant 0 : i32
    %c8_i32_35 = arith.constant 8 : i32
    %55 = arith.muli %c0_i32_34, %c8_i32_35 : i32
    %56 = tpu.assume_multiple %55, 8 : i32
    %57 = arith.index_cast %56 : i32 to index
    %c0_36 = arith.constant 0 : index
    %58 = vector.load %arg22[%57, %c0_36] : memref<64x128xf32, #tpu.memory_space<vmem>>, vector<8x128xf32>
    %59 = arith.index_cast %56 : i32 to index
    %c0_37 = arith.constant 0 : index
    %60 = vector.load %arg23[%59, %c0_37] : memref<64x128xf32, #tpu.memory_space<vmem>>, vector<8x128xf32>
    %61 = arith.addf %51, %58 : vector<8x128xf32>
    %62 = arith.maximumf %54, %61 : vector<8x128xf32>
    %63 = arith.subf %54, %62 : vector<8x128xf32>
    %64 = math.exp %63 : vector<8x128xf32>
    %65 = arith.subf %61, %62 : vector<8x128xf32>
    %66 = math.exp %65 : vector<8x128xf32>
    %67 = arith.mulf %64, %52 : vector<8x128xf32>
    %68 = arith.mulf %66, %60 : vector<8x128xf32>
    %69 = arith.addf %67, %68 : vector<8x128xf32>
    %70 = arith.mulf %64, %53 : vector<8x128xf32>
    %71 = arith.addf %70, %66 : vector<8x128xf32>
    %72 = tpu.reciprocal %71 {approx = true} : vector<8x128xf32> -> vector<8x128xf32>
    %73 = arith.mulf %71, %72 : vector<8x128xf32>
    %cst_38 = arith.constant 2.000000e+00 : f32
    %74 = vector.broadcast %cst_38 : f32 to vector<8x128xf32>
    %75 = arith.subf %74, %73 : vector<8x128xf32>
    %76 = arith.mulf %72, %75 : vector<8x128xf32>
    %77 = arith.mulf %69, %76 : vector<8x128xf32>
    %78 = arith.index_cast %56 : i32 to index
    %c0_39 = arith.constant 0 : index
    %79 = vector.load %arg22[%78, %c0_39] : memref<64x128xf32, #tpu.memory_space<vmem>>, vector<8x128xf32>
    tpu.vector_store %arg22[%78, %c0_39], %77 {strides = array<i32>} : memref<64x128xf32, #tpu.memory_space<vmem>>, vector<8x128xf32>,
    %80 = arith.addf %54, %49 : vector<8x128xf32>
    %81 = arith.maximumf %80, %58 : vector<8x128xf32>
    %82 = arith.subf %80, %81 : vector<8x128xf32>
    %83 = math.exp %82 : vector<8x128xf32>
    %84 = arith.subf %58, %81 : vector<8x128xf32>
    %85 = math.exp %84 : vector<8x128xf32>
    %86 = arith.mulf %83, %52 : vector<8x128xf32>
    %87 = arith.mulf %85, %60 : vector<8x128xf32>
    %88 = arith.addf %86, %87 : vector<8x128xf32>
    %89 = arith.mulf %83, %53 : vector<8x128xf32>
    %90 = arith.addf %89, %85 : vector<8x128xf32>
    %c1_i32 = arith.constant 1 : i32
    %c8_i32_40 = arith.constant 8 : i32
    %91 = arith.muli %c1_i32, %c8_i32_40 : i32
    %92 = tpu.assume_multiple %91, 8 : i32
    %93 = arith.index_cast %92 : i32 to index
    %c0_41 = arith.constant 0 : index
    %94 = vector.load %arg22[%93, %c0_41] : memref<64x128xf32, #tpu.memory_space<vmem>>, vector<8x128xf32>
    %95 = arith.index_cast %92 : i32 to index
    %c0_42 = arith.constant 0 : index
    %96 = vector.load %arg23[%95, %c0_42] : memref<64x128xf32, #tpu.memory_space<vmem>>, vector<8x128xf32>
    %97 = arith.addf %51, %94 : vector<8x128xf32>
    %98 = arith.maximumf %81, %97 : vector<8x128xf32>
    %99 = arith.subf %81, %98 : vector<8x128xf32>
    %100 = math.exp %99 : vector<8x128xf32>
    %101 = arith.subf %97, %98 : vector<8x128xf32>
    %102 = math.exp %101 : vector<8x128xf32>
    %103 = arith.mulf %100, %88 : vector<8x128xf32>
    %104 = arith.mulf %102, %96 : vector<8x128xf32>
    %105 = arith.addf %103, %104 : vector<8x128xf32>
    %106 = arith.mulf %100, %90 : vector<8x128xf32>
    %107 = arith.addf %106, %102 : vector<8x128xf32>
    %108 = tpu.reciprocal %107 {approx = true} : vector<8x128xf32> -> vector<8x128xf32>
    %109 = arith.mulf %107, %108 : vector<8x128xf32>
    %cst_43 = arith.constant 2.000000e+00 : f32
    %110 = vector.broadcast %cst_43 : f32 to vector<8x128xf32>
    %111 = arith.subf %110, %109 : vector<8x128xf32>
    %112 = arith.mulf %108, %111 : vector<8x128xf32>
    %113 = arith.mulf %105, %112 : vector<8x128xf32>
    %114 = arith.index_cast %92 : i32 to index
    %c0_44 = arith.constant 0 : index
    %115 = vector.load %arg22[%114, %c0_44] : memref<64x128xf32, #tpu.memory_space<vmem>>, vector<8x128xf32>
    tpu.vector_store %arg22[%114, %c0_44], %113 {strides = array<i32>} : memref<64x128xf32, #tpu.memory_space<vmem>>, vector<8x128xf32>,
    %116 = arith.addf %81, %49 : vector<8x128xf32>
    %117 = arith.maximumf %116, %94 : vector<8x128xf32>
    %118 = arith.subf %116, %117 : vector<8x128xf32>
    %119 = math.exp %118 : vector<8x128xf32>
    %120 = arith.subf %94, %117 : vector<8x128xf32>
    %121 = math.exp %120 : vector<8x128xf32>
    %122 = arith.mulf %119, %88 : vector<8x128xf32>
    %123 = arith.mulf %121, %96 : vector<8x128xf32>
    %124 = arith.addf %122, %123 : vector<8x128xf32>
    %125 = arith.mulf %119, %90 : vector<8x128xf32>
    %126 = arith.addf %125, %121 : vector<8x128xf32>
    %c2_i32 = arith.constant 2 : i32
    %c8_i32_45 = arith.constant 8 : i32
    %127 = arith.muli %c2_i32, %c8_i32_45 : i32
    %128 = tpu.assume_multiple %127, 8 : i32
    %129 = arith.index_cast %128 : i32 to index
    %c0_46 = arith.constant 0 : index
    %130 = vector.load %arg22[%129, %c0_46] : memref<64x128xf32, #tpu.memory_space<vmem>>, vector<8x128xf32>
    %131 = arith.index_cast %128 : i32 to index
    %c0_47 = arith.constant 0 : index
    %132 = vector.load %arg23[%131, %c0_47] : memref<64x128xf32, #tpu.memory_space<vmem>>, vector<8x128xf32>
    %133 = arith.addf %51, %130 : vector<8x128xf32>
    %134 = arith.maximumf %117, %133 : vector<8x128xf32>
    %135 = arith.subf %117, %134 : vector<8x128xf32>
    %136 = math.exp %135 : vector<8x128xf32>
    %137 = arith.subf %133, %134 : vector<8x128xf32>
    %138 = math.exp %137 : vector<8x128xf32>
    %139 = arith.mulf %136, %124 : vector<8x128xf32>
    %140 = arith.mulf %138, %132 : vector<8x128xf32>
    %141 = arith.addf %139, %140 : vector<8x128xf32>
    %142 = arith.mulf %136, %126 : vector<8x128xf32>
    %143 = arith.addf %142, %138 : vector<8x128xf32>
    %144 = tpu.reciprocal %143 {approx = true} : vector<8x128xf32> -> vector<8x128xf32>
    %145 = arith.mulf %143, %144 : vector<8x128xf32>
    %cst_48 = arith.constant 2.000000e+00 : f32
    %146 = vector.broadcast %cst_48 : f32 to vector<8x128xf32>
    %147 = arith.subf %146, %145 : vector<8x128xf32>
    %148 = arith.mulf %144, %147 : vector<8x128xf32>
    %149 = arith.mulf %141, %148 : vector<8x128xf32>
    %150 = arith.index_cast %128 : i32 to index
    %c0_49 = arith.constant 0 : index
    %151 = vector.load %arg22[%150, %c0_49] : memref<64x128xf32, #tpu.memory_space<vmem>>, vector<8x128xf32>
    tpu.vector_store %arg22[%150, %c0_49], %149 {strides = array<i32>} : memref<64x128xf32, #tpu.memory_space<vmem>>, vector<8x128xf32>,
    %152 = arith.addf %117, %49 : vector<8x128xf32>
    %153 = arith.maximumf %152, %130 : vector<8x128xf32>
    %154 = arith.subf %152, %153 : vector<8x128xf32>
    %155 = math.exp %154 : vector<8x128xf32>
    %156 = arith.subf %130, %153 : vector<8x128xf32>
    %157 = math.exp %156 : vector<8x128xf32>
    %158 = arith.mulf %155, %124 : vector<8x128xf32>
    %159 = arith.mulf %157, %132 : vector<8x128xf32>
    %160 = arith.addf %158, %159 : vector<8x128xf32>
    %161 = arith.mulf %155, %126 : vector<8x128xf32>
    %162 = arith.addf %161, %157 : vector<8x128xf32>
    %c3_i32 = arith.constant 3 : i32
    %c8_i32_50 = arith.constant 8 : i32
    %163 = arith.muli %c3_i32, %c8_i32_50 : i32
    %164 = tpu.assume_multiple %163, 8 : i32
    %165 = arith.index_cast %164 : i32 to index
    %c0_51 = arith.constant 0 : index
    %166 = vector.load %arg22[%165, %c0_51] : memref<64x128xf32, #tpu.memory_space<vmem>>, vector<8x128xf32>
    %167 = arith.index_cast %164 : i32 to index
    %c0_52 = arith.constant 0 : index
    %168 = vector.load %arg23[%167, %c0_52] : memref<64x128xf32, #tpu.memory_space<vmem>>, vector<8x128xf32>
    %169 = arith.addf %51, %166 : vector<8x128xf32>
    %170 = arith.maximumf %153, %169 : vector<8x128xf32>
    %171 = arith.subf %153, %170 : vector<8x128xf32>
    %172 = math.exp %171 : vector<8x128xf32>
    %173 = arith.subf %169, %170 : vector<8x128xf32>
    %174 = math.exp %173 : vector<8x128xf32>
    %175 = arith.mulf %172, %160 : vector<8x128xf32>
    %176 = arith.mulf %174, %168 : vector<8x128xf32>
    %177 = arith.addf %175, %176 : vector<8x128xf32>
    %178 = arith.mulf %172, %162 : vector<8x128xf32>
    %179 = arith.addf %178, %174 : vector<8x128xf32>
    %180 = tpu.reciprocal %179 {approx = true} : vector<8x128xf32> -> vector<8x128xf32>
    %181 = arith.mulf %179, %180 : vector<8x128xf32>
    %cst_53 = arith.constant 2.000000e+00 : f32
    %182 = vector.broadcast %cst_53 : f32 to vector<8x128xf32>
    %183 = arith.subf %182, %181 : vector<8x128xf32>
    %184 = arith.mulf %180, %183 : vector<8x128xf32>
    %185 = arith.mulf %177, %184 : vector<8x128xf32>
    %186 = arith.index_cast %164 : i32 to index
    %c0_54 = arith.constant 0 : index
    %187 = vector.load %arg22[%186, %c0_54] : memref<64x128xf32, #tpu.memory_space<vmem>>, vector<8x128xf32>
    tpu.vector_store %arg22[%186, %c0_54], %185 {strides = array<i32>} : memref<64x128xf32, #tpu.memory_space<vmem>>, vector<8x128xf32>,
    %188 = arith.addf %153, %49 : vector<8x128xf32>
    %189 = arith.maximumf %188, %166 : vector<8x128xf32>
    %190 = arith.subf %188, %189 : vector<8x128xf32>
    %191 = math.exp %190 : vector<8x128xf32>
    %192 = arith.subf %166, %189 : vector<8x128xf32>
    %193 = math.exp %192 : vector<8x128xf32>
    %194 = arith.mulf %191, %160 : vector<8x128xf32>
    %195 = arith.mulf %193, %168 : vector<8x128xf32>
    %196 = arith.addf %194, %195 : vector<8x128xf32>
    %197 = arith.mulf %191, %162 : vector<8x128xf32>
    %198 = arith.addf %197, %193 : vector<8x128xf32>
    %c4_i32 = arith.constant 4 : i32
    %c8_i32_55 = arith.constant 8 : i32
    %199 = arith.muli %c4_i32, %c8_i32_55 : i32
    %200 = tpu.assume_multiple %199, 8 : i32
    %201 = arith.index_cast %200 : i32 to index
    %c0_56 = arith.constant 0 : index
    %202 = vector.load %arg22[%201, %c0_56] : memref<64x128xf32, #tpu.memory_space<vmem>>, vector<8x128xf32>
    %203 = arith.index_cast %200 : i32 to index
    %c0_57 = arith.constant 0 : index
    %204 = vector.load %arg23[%203, %c0_57] : memref<64x128xf32, #tpu.memory_space<vmem>>, vector<8x128xf32>
    %205 = arith.addf %51, %202 : vector<8x128xf32>
    %206 = arith.maximumf %189, %205 : vector<8x128xf32>
    %207 = arith.subf %189, %206 : vector<8x128xf32>
    %208 = math.exp %207 : vector<8x128xf32>
    %209 = arith.subf %205, %206 : vector<8x128xf32>
    %210 = math.exp %209 : vector<8x128xf32>
    %211 = arith.mulf %208, %196 : vector<8x128xf32>
    %212 = arith.mulf %210, %204 : vector<8x128xf32>
    %213 = arith.addf %211, %212 : vector<8x128xf32>
    %214 = arith.mulf %208, %198 : vector<8x128xf32>
    %215 = arith.addf %214, %210 : vector<8x128xf32>
    %216 = tpu.reciprocal %215 {approx = true} : vector<8x128xf32> -> vector<8x128xf32>
    %217 = arith.mulf %215, %216 : vector<8x128xf32>
    %cst_58 = arith.constant 2.000000e+00 : f32
    %218 = vector.broadcast %cst_58 : f32 to vector<8x128xf32>
    %219 = arith.subf %218, %217 : vector<8x128xf32>
    %220 = arith.mulf %216, %219 : vector<8x128xf32>
    %221 = arith.mulf %213, %220 : vector<8x128xf32>
    %222 = arith.index_cast %200 : i32 to index
    %c0_59 = arith.constant 0 : index
    %223 = vector.load %arg22[%222, %c0_59] : memref<64x128xf32, #tpu.memory_space<vmem>>, vector<8x128xf32>
    tpu.vector_store %arg22[%222, %c0_59], %221 {strides = array<i32>} : memref<64x128xf32, #tpu.memory_space<vmem>>, vector<8x128xf32>,
    %224 = arith.addf %189, %49 : vector<8x128xf32>
    %225 = arith.maximumf %224, %202 : vector<8x128xf32>
    %226 = arith.subf %224, %225 : vector<8x128xf32>
    %227 = math.exp %226 : vector<8x128xf32>
    %228 = arith.subf %202, %225 : vector<8x128xf32>
    %229 = math.exp %228 : vector<8x128xf32>
    %230 = arith.mulf %227, %196 : vector<8x128xf32>
    %231 = arith.mulf %229, %204 : vector<8x128xf32>
    %232 = arith.addf %230, %231 : vector<8x128xf32>
    %233 = arith.mulf %227, %198 : vector<8x128xf32>
    %234 = arith.addf %233, %229 : vector<8x128xf32>
    %c5_i32 = arith.constant 5 : i32
    %c8_i32_60 = arith.constant 8 : i32
    %235 = arith.muli %c5_i32, %c8_i32_60 : i32
    %236 = tpu.assume_multiple %235, 8 : i32
    %237 = arith.index_cast %236 : i32 to index
    %c0_61 = arith.constant 0 : index
    %238 = vector.load %arg22[%237, %c0_61] : memref<64x128xf32, #tpu.memory_space<vmem>>, vector<8x128xf32>
    %239 = arith.index_cast %236 : i32 to index
    %c0_62 = arith.constant 0 : index
    %240 = vector.load %arg23[%239, %c0_62] : memref<64x128xf32, #tpu.memory_space<vmem>>, vector<8x128xf32>
    %241 = arith.addf %51, %238 : vector<8x128xf32>
    %242 = arith.maximumf %225, %241 : vector<8x128xf32>
    %243 = arith.subf %225, %242 : vector<8x128xf32>
    %244 = math.exp %243 : vector<8x128xf32>
    %245 = arith.subf %241, %242 : vector<8x128xf32>
    %246 = math.exp %245 : vector<8x128xf32>
    %247 = arith.mulf %244, %232 : vector<8x128xf32>
    %248 = arith.mulf %246, %240 : vector<8x128xf32>
    %249 = arith.addf %247, %248 : vector<8x128xf32>
    %250 = arith.mulf %244, %234 : vector<8x128xf32>
    %251 = arith.addf %250, %246 : vector<8x128xf32>
    %252 = tpu.reciprocal %251 {approx = true} : vector<8x128xf32> -> vector<8x128xf32>
    %253 = arith.mulf %251, %252 : vector<8x128xf32>
    %cst_63 = arith.constant 2.000000e+00 : f32
    %254 = vector.broadcast %cst_63 : f32 to vector<8x128xf32>
    %255 = arith.subf %254, %253 : vector<8x128xf32>
    %256 = arith.mulf %252, %255 : vector<8x128xf32>
    %257 = arith.mulf %249, %256 : vector<8x128xf32>
    %258 = arith.index_cast %236 : i32 to index
    %c0_64 = arith.constant 0 : index
    %259 = vector.load %arg22[%258, %c0_64] : memref<64x128xf32, #tpu.memory_space<vmem>>, vector<8x128xf32>
    tpu.vector_store %arg22[%258, %c0_64], %257 {strides = array<i32>} : memref<64x128xf32, #tpu.memory_space<vmem>>, vector<8x128xf32>,
    %260 = arith.addf %225, %49 : vector<8x128xf32>
    %261 = arith.maximumf %260, %238 : vector<8x128xf32>
    %262 = arith.subf %260, %261 : vector<8x128xf32>
    %263 = math.exp %262 : vector<8x128xf32>
    %264 = arith.subf %238, %261 : vector<8x128xf32>
    %265 = math.exp %264 : vector<8x128xf32>
    %266 = arith.mulf %263, %232 : vector<8x128xf32>
    %267 = arith.mulf %265, %240 : vector<8x128xf32>
    %268 = arith.addf %266, %267 : vector<8x128xf32>
    %269 = arith.mulf %263, %234 : vector<8x128xf32>
    %270 = arith.addf %269, %265 : vector<8x128xf32>
    %c6_i32 = arith.constant 6 : i32
    %c8_i32_65 = arith.constant 8 : i32
    %271 = arith.muli %c6_i32, %c8_i32_65 : i32
    %272 = tpu.assume_multiple %271, 8 : i32
    %273 = arith.index_cast %272 : i32 to index
    %c0_66 = arith.constant 0 : index
    %274 = vector.load %arg22[%273, %c0_66] : memref<64x128xf32, #tpu.memory_space<vmem>>, vector<8x128xf32>
    %275 = arith.index_cast %272 : i32 to index
    %c0_67 = arith.constant 0 : index
    %276 = vector.load %arg23[%275, %c0_67] : memref<64x128xf32, #tpu.memory_space<vmem>>, vector<8x128xf32>
    %277 = arith.addf %51, %274 : vector<8x128xf32>
    %278 = arith.maximumf %261, %277 : vector<8x128xf32>
    %279 = arith.subf %261, %278 : vector<8x128xf32>
    %280 = math.exp %279 : vector<8x128xf32>
    %281 = arith.subf %277, %278 : vector<8x128xf32>
    %282 = math.exp %281 : vector<8x128xf32>
    %283 = arith.mulf %280, %268 : vector<8x128xf32>
    %284 = arith.mulf %282, %276 : vector<8x128xf32>
    %285 = arith.addf %283, %284 : vector<8x128xf32>
    %286 = arith.mulf %280, %270 : vector<8x128xf32>
    %287 = arith.addf %286, %282 : vector<8x128xf32>
    %288 = tpu.reciprocal %287 {approx = true} : vector<8x128xf32> -> vector<8x128xf32>
    %289 = arith.mulf %287, %288 : vector<8x128xf32>
    %cst_68 = arith.constant 2.000000e+00 : f32
    %290 = vector.broadcast %cst_68 : f32 to vector<8x128xf32>
    %291 = arith.subf %290, %289 : vector<8x128xf32>
    %292 = arith.mulf %288, %291 : vector<8x128xf32>
    %293 = arith.mulf %285, %292 : vector<8x128xf32>
    %294 = arith.index_cast %272 : i32 to index
    %c0_69 = arith.constant 0 : index
    %295 = vector.load %arg22[%294, %c0_69] : memref<64x128xf32, #tpu.memory_space<vmem>>, vector<8x128xf32>
    tpu.vector_store %arg22[%294, %c0_69], %293 {strides = array<i32>} : memref<64x128xf32, #tpu.memory_space<vmem>>, vector<8x128xf32>,
    %296 = arith.addf %261, %49 : vector<8x128xf32>
    %297 = arith.maximumf %296, %274 : vector<8x128xf32>
    %298 = arith.subf %296, %297 : vector<8x128xf32>
    %299 = math.exp %298 : vector<8x128xf32>
    %300 = arith.subf %274, %297 : vector<8x128xf32>
    %301 = math.exp %300 : vector<8x128xf32>
    %302 = arith.mulf %299, %268 : vector<8x128xf32>
    %303 = arith.mulf %301, %276 : vector<8x128xf32>
    %304 = arith.addf %302, %303 : vector<8x128xf32>
    %305 = arith.mulf %299, %270 : vector<8x128xf32>
    %306 = arith.addf %305, %301 : vector<8x128xf32>
    %c7_i32 = arith.constant 7 : i32
    %c8_i32_70 = arith.constant 8 : i32
    %307 = arith.muli %c7_i32, %c8_i32_70 : i32
    %308 = tpu.assume_multiple %307, 8 : i32
    %309 = arith.index_cast %308 : i32 to index
    %c0_71 = arith.constant 0 : index
    %310 = vector.load %arg22[%309, %c0_71] : memref<64x128xf32, #tpu.memory_space<vmem>>, vector<8x128xf32>
    %311 = arith.index_cast %308 : i32 to index
    %c0_72 = arith.constant 0 : index
    %312 = vector.load %arg23[%311, %c0_72] : memref<64x128xf32, #tpu.memory_space<vmem>>, vector<8x128xf32>
    %313 = arith.addf %51, %310 : vector<8x128xf32>
    %314 = arith.maximumf %297, %313 : vector<8x128xf32>
    %315 = arith.subf %297, %314 : vector<8x128xf32>
    %316 = math.exp %315 : vector<8x128xf32>
    %317 = arith.subf %313, %314 : vector<8x128xf32>
    %318 = math.exp %317 : vector<8x128xf32>
    %319 = arith.mulf %316, %304 : vector<8x128xf32>
    %320 = arith.mulf %318, %312 : vector<8x128xf32>
    %321 = arith.addf %319, %320 : vector<8x128xf32>
    %322 = arith.mulf %316, %306 : vector<8x128xf32>
    %323 = arith.addf %322, %318 : vector<8x128xf32>
    %324 = tpu.reciprocal %323 {approx = true} : vector<8x128xf32> -> vector<8x128xf32>
    %325 = arith.mulf %323, %324 : vector<8x128xf32>
    %cst_73 = arith.constant 2.000000e+00 : f32
    %326 = vector.broadcast %cst_73 : f32 to vector<8x128xf32>
    %327 = arith.subf %326, %325 : vector<8x128xf32>
    %328 = arith.mulf %324, %327 : vector<8x128xf32>
    %329 = arith.mulf %321, %328 : vector<8x128xf32>
    %330 = arith.index_cast %308 : i32 to index
    %c0_74 = arith.constant 0 : index
    %331 = vector.load %arg22[%330, %c0_74] : memref<64x128xf32, #tpu.memory_space<vmem>>, vector<8x128xf32>
    tpu.vector_store %arg22[%330, %c0_74], %329 {strides = array<i32>} : memref<64x128xf32, #tpu.memory_space<vmem>>, vector<8x128xf32>,
    %332 = arith.addf %297, %49 : vector<8x128xf32>
    %333 = arith.maximumf %332, %310 : vector<8x128xf32>
    %334 = arith.subf %332, %333 : vector<8x128xf32>
    %335 = math.exp %334 : vector<8x128xf32>
    %336 = arith.subf %310, %333 : vector<8x128xf32>
    %337 = math.exp %336 : vector<8x128xf32>
    %338 = arith.mulf %335, %304 : vector<8x128xf32>
    %339 = arith.mulf %337, %312 : vector<8x128xf32>
    %340 = arith.addf %338, %339 : vector<8x128xf32>
    %341 = arith.mulf %335, %306 : vector<8x128xf32>
    %342 = arith.addf %341, %337 : vector<8x128xf32>
    %c8_i32_75 = arith.constant 8 : i32
    %c0_76 = arith.constant 0 : index
    %c0_77 = arith.constant 0 : index
    %343 = vector.load %arg24[%c0_76, %c0_77] : memref<8x128xf32, #tpu.memory_space<vmem>>, vector<8x128xf32>
    tpu.vector_store %arg24[%c0_76, %c0_77], %340 {strides = array<i32>} : memref<8x128xf32, #tpu.memory_space<vmem>>, vector<8x128xf32>,
    %c0_78 = arith.constant 0 : index
    %c0_79 = arith.constant 0 : index
    %344 = vector.load %arg25[%c0_78, %c0_79] : memref<8x128xf32, #tpu.memory_space<vmem>>, vector<8x128xf32>
    tpu.vector_store %arg25[%c0_78, %c0_79], %342 {strides = array<i32>} : memref<8x128xf32, #tpu.memory_space<vmem>>, vector<8x128xf32>,
    %c0_80 = arith.constant 0 : index
    %c0_81 = arith.constant 0 : index
    %345 = vector.load %arg26[%c0_80, %c0_81] : memref<8x128xf32, #tpu.memory_space<vmem>>, vector<8x128xf32>
    tpu.vector_store %arg26[%c0_80, %c0_81], %333 {strides = array<i32>} : memref<8x128xf32, #tpu.memory_space<vmem>>, vector<8x128xf32>,
    %c0_82 = arith.constant 0 : index
    %c0_83 = arith.constant 0 : index
    %c0_84 = arith.constant 0 : index
    %346 = vector.load %arg2[%c0_82, %c0_83, %c0_84] : memref<8x8x128xf32, #tpu.memory_space<vmem>>, vector<8x8x128xf32>
    %347 = vector.shape_cast %346 : vector<8x8x128xf32> to vector<64x128xf32>
    %c8_i32_85 = arith.constant 8 : i32
    %348 = tpu.dynamic_rotate %347 by %c8_i32_85 dim 0 : vector<64x128xf32>, i32 -> vector<64x128xf32>
    %349 = vector.shape_cast %348 : vector<64x128xf32> to vector<8x8x128xf32>
    %350 = tpu.iota {dimensions = array<i32: 0>} : vector<64x128xi32>
    %351 = vector.shape_cast %350 : vector<64x128xi32> to vector<8x8x128xi32>
    %c0_86 = arith.constant 0 : index
    %c0_87 = arith.constant 0 : index
    %352 = vector.load %arg27[%c0_86, %c0_87] : memref<8x128xf32, #tpu.memory_space<vmem>>, vector<8x128xf32>
    %353 = vector.shape_cast %352 : vector<8x128xf32> to vector<1x8x128xf32>
    %354 = vector.shape_cast %353 : vector<1x8x128xf32> to vector<1x8x128xf32>
    %355 = vector.broadcast %354 : vector<1x8x128xf32> to vector<8x8x128xf32>
    %c8_i32_88 = arith.constant 8 : i32
    %356 = vector.broadcast %c8_i32_88 : i32 to vector<8x8x128xi32>
    %357 = arith.cmpi slt, %351, %356 : vector<8x8x128xi32>
    %358 = arith.select %357, %355, %349 : vector<8x8x128xi1>, vector<8x8x128xf32>
    %359 = arith.subf %346, %358 : vector<8x8x128xf32>
    %c0_89 = arith.constant 0 : index
    %c0_90 = arith.constant 0 : index
    %360 = vector.load %arg5[%c0_89, %c0_90] : memref<1x128xf32, #tpu.memory_space<vmem>>, vector<1x128xf32>
    %361 = vector.shape_cast %360 : vector<1x128xf32> to vector<1x1x128xf32>
    %362 = vector.broadcast %361 : vector<1x1x128xf32> to vector<8x8x128xf32>
    %363 = arith.mulf %359, %362 : vector<8x8x128xf32>
    %364 = arith.addf %358, %363 : vector<8x8x128xf32>
    %365 = vector.shape_cast %364 : vector<8x8x128xf32> to vector<64x128xf32>
    %366 = vector.extract_strided_slice %346 {offsets = [7, 0, 0], sizes = [1, 8, 128], strides = [1, 1, 1]} : vector<8x8x128xf32> to vector<1x8x128xf32>
    %367 = vector.shape_cast %366 : vector<1x8x128xf32> to vector<8x128xf32>
    %c0_91 = arith.constant 0 : index
    %c0_92 = arith.constant 0 : index
    %368 = vector.load %arg27[%c0_91, %c0_92] : memref<8x128xf32, #tpu.memory_space<vmem>>, vector<8x128xf32>
    tpu.vector_store %arg27[%c0_91, %c0_92], %367 {strides = array<i32>} : memref<8x128xf32, #tpu.memory_space<vmem>>, vector<8x128xf32>,
    %369 = arith.truncf %365 : vector<64x128xf32> to vector<64x128xbf16>
    %c0_93 = arith.constant 0 : index
    %c0_94 = arith.constant 0 : index
    %370 = vector.load %arg19[%c0_93, %c0_94] : memref<128x128xbf16, #tpu.memory_space<vmem>>, vector<128x128xbf16>
    %cst_95 = arith.constant dense<0.000000e+00> : vector<64x128xf32>
    %371 = tpu.matmul %369, %370, %cst_95 {dimension_numbers = #tpu.dot_dimension_numbers<[1], [0], [0], [1], [0, 0, 1, 1], [], []>} : vector<64x128xbf16>, vector<128x128xbf16>, vector<64x128xf32> -> vector<64x128xf32>
    %c0_96 = arith.constant 0 : index
    %c0_97 = arith.constant 0 : index
    %372 = vector.load %arg11[%c0_96, %c0_97] : memref<1x128xf32, #tpu.memory_space<vmem>>, vector<1x128xf32>
    %373 = vector.broadcast %372 : vector<1x128xf32> to vector<64x128xf32>
    %374 = arith.addf %371, %373 : vector<64x128xf32>
    %375 = arith.negf %374 : vector<64x128xf32>
    %376 = math.exp %375 : vector<64x128xf32>
    %cst_98 = arith.constant 1.000000e+00 : f32
    %377 = vector.broadcast %cst_98 : f32 to vector<64x128xf32>
    %378 = arith.addf %377, %376 : vector<64x128xf32>
    %379 = arith.divf %377, %378 : vector<64x128xf32>
    %c0_99 = arith.constant 0 : index
    %c0_100 = arith.constant 0 : index
    %380 = vector.load %arg22[%c0_99, %c0_100] : memref<64x128xf32, #tpu.memory_space<vmem>>, vector<64x128xf32>
    %381 = arith.mulf %379, %380 : vector<64x128xf32>
    %382 = arith.truncf %381 : vector<64x128xf32> to vector<64x128xbf16>
    %c0_101 = arith.constant 0 : index
    %c0_102 = arith.constant 0 : index
    %383 = vector.load %arg20[%c0_101, %c0_102] : memref<128x128xbf16, #tpu.memory_space<vmem>>, vector<128x128xbf16>
    %cst_103 = arith.constant dense<0.000000e+00> : vector<64x128xf32>
    %384 = tpu.matmul %382, %383, %cst_103 {dimension_numbers = #tpu.dot_dimension_numbers<[1], [0], [0], [1], [0, 0, 1, 1], [], []>} : vector<64x128xbf16>, vector<128x128xbf16>, vector<64x128xf32> -> vector<64x128xf32>
    %c0_104 = arith.constant 0 : index
    %c0_105 = arith.constant 0 : index
    %385 = vector.load %arg15[%c0_104, %c0_105] : memref<1x128xf32, #tpu.memory_space<vmem>>, vector<1x128xf32>
    %386 = vector.broadcast %385 : vector<1x128xf32> to vector<64x128xf32>
    %387 = arith.addf %384, %386 : vector<64x128xf32>
    %388 = vector.shape_cast %387 : vector<64x128xf32> to vector<8x8x128xf32>
    %c0_106 = arith.constant 0 : index
    %c0_107 = arith.constant 0 : index
    %c0_108 = arith.constant 0 : index
    %389 = vector.load %arg16[%c0_106, %c0_107, %c0_108] : memref<8x8x128xf32, #tpu.memory_space<vmem>>, vector<8x8x128xf32>
    tpu.vector_store %arg16[%c0_106, %c0_107, %c0_108], %388 {strides = array<i32>} : memref<8x8x128xf32, #tpu.memory_space<vmem>>, vector<8x8x128xf32>,
    return
  }
  func.func @transform_0(%arg0: i32, %arg1: i32) -> (i32, i32, i32) {
    %c0_i32 = arith.constant 0 : i32
    %c0_i32_0 = arith.constant 0 : i32
    return %arg1, %arg0, %c0_i32 : i32, i32, i32
  }
  func.func @transform_1(%arg0: i32, %arg1: i32) -> (i32, i32) {
    %c0_i32 = arith.constant 0 : i32
    %c0_i32_0 = arith.constant 0 : i32
    %c0_i32_1 = arith.constant 0 : i32
    return %c0_i32, %c0_i32_0 : i32, i32
  }
  func.func @transform_2(%arg0: i32, %arg1: i32) -> (i32, i32) {
    %c0_i32 = arith.constant 0 : i32
    %c0_i32_0 = arith.constant 0 : i32
    %c0_i32_1 = arith.constant 0 : i32
    return %c0_i32, %c0_i32_0 : i32, i32
  }
  func.func @transform_3(%arg0: i32, %arg1: i32) -> (i32, i32) {
    %c0_i32 = arith.constant 0 : i32
    %c0_i32_0 = arith.constant 0 : i32
    %c0_i32_1 = arith.constant 0 : i32
    return %c0_i32, %c0_i32_0 : i32, i32
  }
  func.func @transform_5(%arg0: i32, %arg1: i32) -> (i32, i32) {
    %c0_i32 = arith.constant 0 : i32
    %c0_i32_0 = arith.constant 0 : i32
    %c0_i32_1 = arith.constant 0 : i32
    return %c0_i32, %c0_i32_0 : i32, i32
  }
  func.func @transform_7(%arg0: i32, %arg1: i32) -> (i32, i32) {
    %c0_i32 = arith.constant 0 : i32
    %c0_i32_0 = arith.constant 0 : i32
    %c0_i32_1 = arith.constant 0 : i32
    return %c0_i32, %c0_i32_0 : i32, i32
  }
  func.func @transform_9(%arg0: i32, %arg1: i32) -> (i32, i32) {
    %c0_i32 = arith.constant 0 : i32
    %c0_i32_0 = arith.constant 0 : i32
    %c0_i32_1 = arith.constant 0 : i32
    return %c0_i32, %c0_i32_0 : i32, i32
  }
  func.func @transform_10(%arg0: i32, %arg1: i32) -> (i32, i32) {
    %c0_i32 = arith.constant 0 : i32
    %c0_i32_0 = arith.constant 0 : i32
    %c0_i32_1 = arith.constant 0 : i32
    return %c0_i32, %c0_i32_0 : i32, i32
  }
  func.func @transform_11(%arg0: i32, %arg1: i32) -> (i32, i32) {
    %c0_i32 = arith.constant 0 : i32
    %c0_i32_0 = arith.constant 0 : i32
    %c0_i32_1 = arith.constant 0 : i32
    return %c0_i32, %c0_i32_0 : i32, i32
  }
  func.func @transform_13(%arg0: i32, %arg1: i32) -> (i32, i32) {
    %c0_i32 = arith.constant 0 : i32
    %c0_i32_0 = arith.constant 0 : i32
    %c0_i32_1 = arith.constant 0 : i32
    return %c0_i32, %c0_i32_0 : i32, i32
  }
  func.func @transform_14(%arg0: i32, %arg1: i32) -> (i32, i32, i32) {
    %c0_i32 = arith.constant 0 : i32
    %c0_i32_0 = arith.constant 0 : i32
    return %arg1, %arg0, %c0_i32 : i32, i32, i32
  }
}

</mosaic_0001>

<bundles_post_ra>
// kernel: tpu_custom_call.1
= control target key start
LH: loop header
LB: loop body
LE: loop exit
PB: predicated region body
PF: predicated region fallthrough
CT: control target
= control target key end

     0   :  { %19 = vsyncpa [#allocation14], 0  ;;  %s2056_s0 = inlined_call_operand.hbm [shape: f32[8,8,128], index: 0, kind: input, shape index: {}]   ;;  %s2057_s1 = inlined_call_operand.vmem [shape: f32[1,128], index: 1, kind: input, shape index: {}]   ;;  %s2058_s2 = inlined_call_operand.vmem [shape: f32[1,128], index: 2, kind: input, shape index: {}]   ;;  %s2059_s3 = inlined_call_operand.vmem [shape: f32[1,128], index: 3, kind: input, shape index: {}]   ;;  %s2060_s4 = inlined_call_operand.hbm [shape: bf16[128,128], index: 4, kind: input, shape index: {}]   ;;  %s2061_s5 = inlined_call_operand.vmem [shape: f32[1,128], index: 5, kind: input, shape index: {}]   ;;  %s2062_s6 = inlined_call_operand.hbm [shape: bf16[128,128], index: 6, kind: input, shape index: {}]   ;;  %s2063_s7 = inlined_call_operand.vmem [shape: f32[1,128], index: 7, kind: input, shape index: {}]   ;;  %s2064_s8 = inlined_call_operand.hbm [shape: bf16[128,128], index: 8, kind: input, shape index: {}]   ;;  %s2065_s9 = inlined_call_operand.vmem [shape: f32[1,128], index: 9, kind: input, shape index: {}]   ;;  %s2066_s10 = inlined_call_operand.vmem [shape: f32[1,128], index: 10, kind: input, shape index: {}]   ;;  %s2067_s11 = inlined_call_operand.vmem [shape: f32[1,128], index: 11, kind: input, shape index: {}]   ;;  %s2068_s12 = inlined_call_operand.hbm [shape: bf16[128,128], index: 12, kind: input, shape index: {}]   ;;  %s2069_s13 = inlined_call_operand.vmem [shape: f32[1,128], index: 13, kind: input, shape index: {}]   ;;  %s2070_s14 = inlined_call_operand.hbm [shape: f32[8,8,128], index: 14, kind: output, shape index: {}]  }
   0x1   :  { %20 = vsyncpa [#allocation15], 0  ;;  %s1460_s29 = smov [#allocation13]   ;;  %s1316_s17 = scalar_lea.hbm %s2056_s0, 1024 }
   0x2   :  { %s26_s30 = sshll.u32 %s1460_s29, 4  ;;  %p1317_p0 = scmp.ne.s32.totalorder %s2056_s0, %s1316_s17  ;;  %s27_s30 = int_to_ptr.vmem [resolvable:$true] %s26_s30 }
   0x3   :  { %p1320_p1 = scmp.lt.u32.totalorder %s1316_s17, %s2056_s0 }
   0x5   :  { %p1322_p2 = pnand %p1320_p1, %p1317_p0 }
   0x7   :  { %1325 = shalt.err (!%p1322_p2)
}
   0x8   :  { %s1326_s22 = scalar_lea.vmem %s27_s30, 1024  ;;  %p1331_p4 = scmp.lt.s32.totalorder %s27_s30, %s27_s30 }
   0x9   :  { %p1327_p3 = scmp.ne.s32.totalorder %s27_s30, %s1326_s22  ;;  %p1332_p5 = scmp.lt.s32.totalorder %s1326_s22, %s1326_s22 }
   0xb   :  { %p1333_p6 = por %p1332_p5, %p1331_p4 }
   0xd   :  { %p1334_p7 = pnand %p1333_p6, %p1327_p3 }
   0xf   :  { %1337 = shalt.err (!%p1334_p7)
}
  0x10   :  { %s1461_s23 = smov 128   ;;  %s1462_s24 = smov 8  }
  0x11   :  { %32 = dma.hbm_to_vmem [thread:$0]  %s2056_s0, 1024, %s27_s30, [#allocation14], %s1461_s23, %s1461_s23, %s1462_s24  }
  0x12   :  { %1448 = dma.done.wait [#allocation14], 1024  }
  0x13   :  { %1449 = vsyncadd [#allocation14], 4294966272  ;;  %s1463_s27 = smov [#allocation2]   ;;  %s1464_s29 = smov [#allocation3]  }
  0x14   :  { %s66_s28 = sshll.u32 %s1463_s27, 4  ;;  %s78_s15 = sshll.u32 %s1464_s29, 4  ;;  %s67_s28 = int_to_ptr.vmem [resolvable:$true] %s66_s28  ;;  %s79_s15 = int_to_ptr.vmem [resolvable:$true] %s78_s15 }
  0x15   :  { %s1338_s18 = scalar_lea.hbm %s2060_s4, 1024 }
  0x16   :  { %p1339_p8 = scmp.ne.s32.totalorder %s2060_s4, %s1338_s18  ;;  %p1342_p9 = scmp.lt.u32.totalorder %s1338_s18, %s2060_s4 }
  0x18   :  { %p1344_p10 = pnand %p1342_p9, %p1339_p8 }
  0x1a   :  { %1347 = shalt.err (!%p1344_p10)  }
  0x1b   :  { %s1348_s0 = scalar_lea.vmem %s67_s28, 1024  ;;  %p1353_p12 = scmp.lt.s32.totalorder %s67_s28, %s67_s28 }
  0x1c   :  { %p1349_p11 = scmp.ne.s32.totalorder %s67_s28, %s1348_s0  ;;  %p1354_p13 = scmp.lt.s32.totalorder %s1348_s0, %s1348_s0 }
  0x1e   :  { %p1355_p0 = por %p1354_p13, %p1353_p12 }
  0x20   :  { %p1356_p1 = pnand %p1355_p0, %p1349_p11 }
  0x22   :  { %1359 = shalt.err (!%p1356_p1)  }
  0x23   :  { %69 = dma.hbm_to_vmem [thread:$0]  %s2060_s4, 1024, %s67_s28, [#allocation6] }
  0x24   :  { %s1360_s29 = scalar_lea.hbm %s2062_s6, 1024 }
  0x25   :  { %p1361_p2 = scmp.ne.s32.totalorder %s2062_s6, %s1360_s29  ;;  %p1364_p3 = scmp.lt.u32.totalorder %s1360_s29, %s2062_s6 }
  0x27   :  { %p1366_p4 = pnand %p1364_p3, %p1361_p2 }
  0x29   :  { %1369 = shalt.err (!%p1366_p4)  }
  0x2a   :  { %s1370_s20 = scalar_lea.vmem %s79_s15, 1024  ;;  %p1375_p6 = scmp.lt.s32.totalorder %s79_s15, %s79_s15 }
  0x2b   :  { %p1371_p5 = scmp.ne.s32.totalorder %s79_s15, %s1370_s20  ;;  %p1376_p7 = scmp.lt.s32.totalorder %s1370_s20, %s1370_s20 }
  0x2d   :  { %p1377_p8 = por %p1376_p7, %p1375_p6 }
  0x2f   :  { %p1378_p9 = pnand %p1377_p8, %p1371_p5 }
  0x31   :  { %1381 = shalt.err (!%p1378_p9)  }
  0x32   :  { %81 = dma.hbm_to_vmem [thread:$0]  %s2062_s6, 1024, %s79_s15, [#allocation6 + $0x1] }
  0x33   :  { %s1465_s21 = smov [#allocation4]   ;;  %s1466_s0 = smov [#allocation5]  }
  0x34   :  { %s90_s22 = sshll.u32 %s1465_s21, 4  ;;  %s102_s30 = sshll.u32 %s1466_s0, 4  ;;  %s91_s22 = int_to_ptr.vmem [resolvable:$true] %s90_s22  ;;  %s103_s30 = int_to_ptr.vmem [resolvable:$true] %s102_s30 }
  0x35   :  { %s1382_s27 = scalar_lea.hbm %s2064_s8, 1024 }
  0x36   :  { %p1383_p10 = scmp.ne.s32.totalorder %s2064_s8, %s1382_s27  ;;  %p1386_p11 = scmp.lt.u32.totalorder %s1382_s27, %s2064_s8 }
  0x38   :  { %p1388_p12 = pnand %p1386_p11, %p1383_p10 }
  0x3a   :  { %1391 = shalt.err (!%p1388_p12)  }
  0x3b   :  { %s1392_s6 = scalar_lea.vmem %s91_s22, 1024  ;;  %p1397_p0 = scmp.lt.s32.totalorder %s91_s22, %s91_s22 }
  0x3c   :  { %p1393_p13 = scmp.ne.s32.totalorder %s91_s22, %s1392_s6  ;;  %p1398_p1 = scmp.lt.s32.totalorder %s1392_s6, %s1392_s6 }
  0x3e   :  { %p1399_p2 = por %p1398_p1, %p1397_p0 }
  0x40   :  { %p1400_p3 = pnand %p1399_p2, %p1393_p13 }
  0x42   :  { %1403 = shalt.err (!%p1400_p3)  }
  0x43   :  { %93 = dma.hbm_to_vmem [thread:$0]  %s2064_s8, 1024, %s91_s22, [#allocation6 + $0x2] }
  0x44   :  { %s1404_s28 = scalar_lea.hbm %s2068_s12, 1024 }
  0x45   :  { %p1405_p4 = scmp.ne.s32.totalorder %s2068_s12, %s1404_s28  ;;  %p1408_p5 = scmp.lt.u32.totalorder %s1404_s28, %s2068_s12 }
  0x47   :  { %p1410_p6 = pnand %p1408_p5, %p1405_p4 }
  0x49   :  { %1413 = shalt.err (!%p1410_p6)  }
  0x4a   :  { %s1414_s27 = scalar_lea.vmem %s103_s30, 1024  ;;  %p1419_p8 = scmp.lt.s32.totalorder %s103_s30, %s103_s30 }
  0x4b   :  { %p1415_p7 = scmp.ne.s32.totalorder %s103_s30, %s1414_s27  ;;  %p1420_p9 = scmp.lt.s32.totalorder %s1414_s27, %s1414_s27 }
  0x4d   :  { %p1421_p10 = por %p1420_p9, %p1419_p8 }
  0x4f   :  { %p1422_p11 = pnand %p1421_p10, %p1415_p7 }
  0x51   :  { %1425 = shalt.err (!%p1422_p11)  }
  0x52   :  { %105 = dma.hbm_to_vmem [thread:$0]  %s2068_s12, 1024, %s103_s30, [#allocation6 + $0x3] }
  0x53   :  { %1450 = dma.done.wait [#allocation6], 1024 }
  0x54   :  { %1451 = vsyncadd [#allocation6], 4294966272 }
  0x55   :  { %1452 = dma.done.wait [#allocation6 + $0x1], 1024 }
  0x56   :  { %1453 = vsyncadd [#allocation6 + $0x1], 4294966272 }
  0x57   :  { %1454 = dma.done.wait [#allocation6 + $0x2], 1024 }
  0x58   :  { %1455 = vsyncadd [#allocation6 + $0x2], 4294966272 }
  0x59   :  { %1456 = dma.done.wait [#allocation6 + $0x3], 1024 }
  0x5a   :  { %1457 = vsyncadd [#allocation6 + $0x3], 4294966272  ;;  %v212_v0 = vld [vmem:[#allocation2] sm:$0xff]  ;;  %v213_v1 = vld [vmem:[#allocation2 + $0x8] sm:$0xff]  ;;  %s1467_s4 = smov [#allocation16]  }
  0x5b   :  { %1102 = vmatprep.subr.bf16.mxu0 %v212_v0  ;;  %v304_v2 = vld [vmem:[#allocation3] sm:$0xff]  ;;  %v305_v3 = vld [vmem:[#allocation3 + $0x8] sm:$0xff]  ;;  %v214_v4 = vld [vmem:[#allocation2 + $0x10] sm:$0xff]  ;;  %s995_s28 = sshll.u32 %s1467_s4, 4  ;;  %s996_s28 = int_to_ptr.vmem [resolvable:$true] %s995_s28 }
  0x5c   :  { %1103 = vmatpush3.bf16.msra.mxu0 %v212_v0  ;;  %1126 = vmatprep.subr.bf16.mxu1 %v304_v2  ;;  %v1606_v5 = vld [vmem:[#allocation13] sm:$0xff]  ;;  %v1608_v6 = vld [vmem:[#allocation13 + $0x8] sm:$0xff]  ;;  %v306_v8 = vld [vmem:[#allocation3 + $0x10] sm:$0xff]  ;;  %p1431_p13 = scmp.lt.s32.totalorder %s996_s28, %s996_s28 }
  0x5d   :  { %1104 = vmatprep.subr.bf16.mxu0 %v213_v1  ;;  %1127 = vmatpush3.bf16.msra.mxu1 %v304_v2  ;;  %v1613_v7 = vld [vmem:[%s2057_s1] ss:$0 sm:$0xff]  ;;  %v1617_v9 = vsub.f32 %v1608_v6, %v1606_v5  ;;  %v215_v12 = vld [vmem:[#allocation2 + $0x18] sm:$0xff]  ;;  %v1633_v21 = vld [vmem:[#allocation13 + $0x10] sm:$0xff] }
  0x5e   :  { %1128 = vmatprep.subr.bf16.mxu1 %v305_v3  ;;  %v169_v10 = vmul.f32 %v1613_v7, %v1606_v5  ;;  %v307_v13 = vld [vmem:[#allocation3 + $0x18] sm:$0xff]  ;;  %v1627_v15 = vld [vmem:[%s2058_s2] ss:$0 sm:$0xff]  ;;  %v1640_v25 = vld [vmem:[#allocation13 + $0x28] sm:$0xff]  ;;  %v1644_v28 = vsub.f32 %v1633_v21, %v1608_v6 }
  0x5f   :  { %v170_v11 = vmul.f32 %v1613_v7, %v1617_v9  ;;  %v216_v17 = vld [vmem:[#allocation2 + $0x20] sm:$0xff]  ;;  %v192_v18 = vmul.f32 %v1627_v15, %v1606_v5  ;;  %v193_v19 = vmul.f32 %v1627_v15, %v1617_v9  ;;  %v1635_v22 = vld [vmem:[#allocation13 + $0x18] sm:$0xff]  ;;  %v217_v26 = vld [vmem:[#allocation2 + $0x28] sm:$0xff] }
  0x60   :  { %1105 = vmatpush3.bf16.msra.mxu0 %v213_v1  ;;  %v308_v20 = vld [vmem:[#allocation3 + $0x20] sm:$0xff]  ;;  %v1648_v29 = vsub.f32 %v1635_v22, %v1633_v21  ;;  %v309_v30 = vld [vmem:[#allocation3 + $0x28] sm:$0xff]  ;;  %v218_v33 = vld [vmem:[#allocation2 + $0x30] sm:$0xff]  ;;  %v171_v34 = vmul.f32 %v1613_v7, %v1644_v28  ;;  %v194_v41 = vmul.f32 %v1627_v15, %v1644_v28 }
  0x61   :  { %1106 = vmatprep.subr.bf16.mxu0 %v214_v4  ;;  %1129 = vmatpush3.bf16.msra.mxu1 %v305_v3  ;;  %v178_v14 = vadd.f32 %v170_v11, %v1606_v5  ;;  %v201_v23 = vadd.f32 %v193_v19, %v1606_v5  ;;  %v1638_v24 = vld [vmem:[#allocation13 + $0x20] sm:$0xff]  ;;  %v310_v36 = vld [vmem:[#allocation3 + $0x30] sm:$0xff]  ;;  %v127_v40 = vld [vmem:[#allocation13 + $0x38] sm:$0xff] }
  0x62   :  { %1130 = vmatprep.subr.bf16.mxu1 %v306_v8  ;;  %v1652_v31 = vsub.f32 %v1638_v24, %v1635_v22  ;;  %v1656_v32 = vsub.f32 %v1640_v25, %v1638_v24  ;;  %v172_v35 = vmul.f32 %v1613_v7, %v1648_v29  ;;  %v1666_v39 = vld [vmem:[#allocation13 + $0x30] sm:$0xff]  ;;  %v195_v42 = vmul.f32 %v1627_v15, %v1648_v29  ;;  %v219_v43 = vld [vmem:[#allocation2 + $0x38] sm:$0xff]  ;;  %v1692_v55 = vld [vmem:[%s2059_s3] ss:$0 sm:$0xff] }
  0x63   :  { %v208_v16 = vpack.c.bf16 %v178_v14, %v169_v10  ;;  %v300_v27 = vpack.c.bf16 %v201_v23, %v192_v18  ;;  %v179_v46 = vadd.f32 %v171_v34, %v1608_v6  ;;  %v1680_v48 = vsub.f32 %v1666_v39, %v1640_v25  ;;  %v311_v50 = vld [vmem:[#allocation3 + $0x38] sm:$0xff]  ;;  %v754_v56 = vld [vmem:[#allocation4] sm:$0xff]  ;;  %v755_v3 = vld [vmem:[#allocation4 + $0x8] sm:$0xff] }
  0x64   :  { %1107 = vmatpush3.bf16.msra.mxu0 %v214_v4  ;;  %v173_v37 = vmul.f32 %v1613_v7, %v1652_v31  ;;  %v174_v38 = vmul.f32 %v1613_v7, %v1656_v32  ;;  %v196_v44 = vmul.f32 %v1627_v15, %v1652_v31  ;;  %v197_v45 = vmul.f32 %v1627_v15, %v1656_v32  ;;  %v759_v18 = vld [vmem:[#allocation4 + $0x28] sm:$0xff]  ;;  %v760_v19 = vld [vmem:[#allocation4 + $0x30] sm:$0xff] }
  0x65   :  { %1108 = vmatprep.subr.bf16.mxu0 %v215_v12  ;;  %1131 = vmatpush3.bf16.msra.mxu1 %v306_v8  ;;  %v180_v47 = vadd.f32 %v172_v35, %v1633_v21  ;;  %v1683_v49 = vsub.f32 %v127_v40, %v1666_v39  ;;  %v202_v53 = vadd.f32 %v194_v41, %v1608_v6  ;;  %v905_v40 = vld [vmem:[#allocation5 + $0x18] sm:$0xff]  ;;  %v906_v41 = vld [vmem:[#allocation5 + $0x20] sm:$0xff] }
  0x66   :  { %1132 = vmatprep.subr.bf16.mxu1 %v307_v13  ;;  %1118 = vmatprep.mubr.bf16.mxu0 %v208_v16  ;;  %v181_v51 = vadd.f32 %v173_v37, %v1635_v22  ;;  %v182_v52 = vadd.f32 %v174_v38, %v1638_v24  ;;  %v203_v54 = vadd.f32 %v195_v42, %v1633_v21  ;;  %v904_v38 = vld [vmem:[#allocation5 + $0x10] sm:$0xff]  ;;  %v909_v42 = vld [vmem:[#allocation5 + $0x38] sm:$0xff] }
  0x67   :  { %1142 = vmatprep.mubr.bf16.mxu1 %v300_v27  ;;  %v204_v57 = vadd.f32 %v196_v44, %v1635_v22  ;;  %v205_v58 = vadd.f32 %v197_v45, %v1638_v24  ;;  %v209_v59 = vpack.c.bf16 %v180_v47, %v179_v46  ;;  %v175_v60 = vmul.f32 %v1613_v7, %v1680_v48 }
  0x68   :  { %1109 = vmatpush3.bf16.msra.mxu0 %v215_v12  ;;  %v176_v61 = vmul.f32 %v1613_v7, %v1683_v49  ;;  %v210_v62 = vpack.c.bf16 %v182_v52, %v181_v51  ;;  %v734_v63 = vmul.f32 %v1692_v55, %v1617_v9  ;;  %v301_v0 = vpack.c.bf16 %v203_v54, %v202_v53  ;;  %v1739_v51 = vld [vmem:[%s2061_s5] ss:$0 sm:$0xff] }
  0x69   :  { %1110 = vmatprep.subr.bf16.mxu0 %v216_v17  ;;  %1133 = vmatpush3.bf16.msra.mxu1 %v307_v13  ;;  %v198_v1 = vmul.f32 %v1627_v15, %v1680_v48  ;;  %v199_v2 = vmul.f32 %v1627_v15, %v1683_v49  ;;  %v302_v4 = vpack.c.bf16 %v205_v58, %v204_v57  ;;  %v756_v13 = vld [vmem:[#allocation4 + $0x10] sm:$0xff]  ;;  %v398_v45 = vlaneseq  ;;  %v1745_v54 = vld [vmem:[%s2067_s11] ss:$0 sm:$0xff] }
  0x6a   :  { %1134 = vmatprep.subr.bf16.mxu1 %v308_v20  ;;  %v183_v8 = vadd.f32 %v175_v60, %v1640_v25  ;;  %v184_v7 = vadd.f32 %v176_v61, %v1666_v39  ;;  %v733_v9 = vmul.f32 %v1692_v55, %v1606_v5  ;;  %v742_v10 = vadd.f32 %v734_v63, %v1606_v5  ;;  %v758_v5 = vld [vmem:[#allocation4 + $0x20] sm:$0xff] }
  0x6b   :  { %v206_v11 = vadd.f32 %v198_v1, %v1640_v25  ;;  %v207_v12 = vadd.f32 %v199_v2, %v1666_v39  ;;  %v736_v23 = vmul.f32 %v1692_v55, %v1648_v29  ;;  %v738_v27 = vmul.f32 %v1692_v55, %v1656_v32 }
  0x6c   :  { %1111 = vmatpush3.bf16.msra.mxu0 %v216_v17  ;;  %v211_v14 = vpack.c.bf16 %v184_v7, %v183_v8  ;;  %v750_v15 = vpack.c.bf16 %v742_v10, %v733_v9  ;;  %v757_v17 = vld [vmem:[#allocation4 + $0x18] sm:$0xff]  ;;  %v399_v46 = vshrl.u32 %v398_v45, 7  ;;  %v1759_v7 = vld [vmem:[%s2063_s7] ss:$0 sm:$0xff] }
  0x6d   :  { %1112 = vmatprep.subr.bf16.mxu0 %v217_v26  ;;  %1135 = vmatpush3.bf16.msra.mxu1 %v308_v20  ;;  %v303_v16 = vpack.c.bf16 %v207_v12, %v206_v11  ;;  %v735_v20 = vmul.f32 %v1692_v55, %v1644_v28  ;;  %v744_v34 = vadd.f32 %v736_v23, %v1633_v21 }
  0x6e   :  { %1136 = vmatprep.subr.bf16.mxu1 %v309_v30  ;;  %v746_v28 = vadd.f32 %v738_v27, %v1638_v24  ;;  %v903_v24 = vld [vmem:[#allocation5 + $0x8] sm:$0xff] }
  0x70   :  { %1113 = vmatpush3.bf16.msra.mxu0 %v217_v26  ;;  %v737_v26 = vmul.f32 %v1692_v55, %v1652_v31  ;;  %v740_v31 = vmul.f32 %v1692_v55, %v1683_v49  ;;  %v400_v49 = vsub.s32 0, %v399_v46 }
  0x71   :  { %1114 = vmatprep.subr.bf16.mxu0 %v218_v33  ;;  %1137 = vmatpush3.bf16.msra.mxu1 %v309_v30  ;;  %v761_v30 = vld [vmem:[#allocation4 + $0x38] sm:$0xff] }
  0x72   :  { %1138 = vmatprep.subr.bf16.mxu1 %v310_v36  ;;  %v745_v35 = vadd.f32 %v737_v26, %v1635_v22  ;;  %v748_v21 = vadd.f32 %v740_v31, %v1666_v39  ;;  %v902_v22 = vld [vmem:[#allocation5] sm:$0xff]  ;;  %v908_v39 = vld [vmem:[#allocation5 + $0x30] sm:$0xff] }
  0x74   :  { %1115 = vmatpush3.bf16.msra.mxu0 %v218_v33  ;;  %v743_v33 = vadd.f32 %v735_v20, %v1608_v6  ;;  %v752_v32 = vpack.c.bf16 %v746_v28, %v745_v35 }
  0x75   :  { %1116 = vmatprep.subr.bf16.mxu0 %v219_v43  ;;  %1139 = vmatpush3.bf16.msra.mxu1 %v310_v36  ;;  %v739_v36 = vmul.f32 %v1692_v55, %v1680_v48 }
  0x76   :  { %1140 = vmatprep.subr.bf16.mxu1 %v311_v50  ;;  %v751_v29 = vpack.c.bf16 %v744_v34, %v743_v33 }
  0x77   :  { %v747_v6 = vadd.f32 %v739_v36, %v1640_v25  ;;  %v907_v25 = vld [vmem:[#allocation5 + $0x28] sm:$0xff] }
  0x78   :  { %1117 = vmatpush3.bf16.msra.mxu0 %v219_v43  ;;  %v392_v43 = vld [vmem:[%s2066_s10] sm:$0x1] }
  0x79   :  { %1150 = vmatprep.subr.bf16.mxu0 %v754_v56  ;;  %1141 = vmatpush3.bf16.msra.mxu1 %v311_v50  ;;  %v753_v37 = vpack.c.bf16 %v748_v21, %v747_v6  ;;  %v393_v44 = vmul.f32 1.442695, %v392_v43 }
  0x7a   :  { %1174 = vmatprep.subr.bf16.mxu1 %v902_v22 }
  0x7b   :  { %1119 = vmatmul.mubr.bf16.vlgmr.msra.gmra.mrb[0].mxu0 %v209_v59  ;;  %1206 = vpow2.f32 %v393_v44 }
  0x7c   :  { %1151 = vmatpush3.bf16.msra.mxu0 %v754_v56  ;;  %1122 = vmatprep.mubr.bf16.mxu0 %v210_v62 }
  0x7d   :  { %1152 = vmatprep.subr.bf16.mxu0 %v755_v3  ;;  %1143 = vmatmul.mubr.bf16.vlgmr.msra.gmra.mrb[0].mxu1 %v301_v0 }
  0x7e   :  { %1146 = vmatprep.mubr.bf16.mxu1 %v302_v4  ;;  %1175 = vmatpush3.bf16.msra.mxu1 %v902_v22 }
  0x7f   :  { %1176 = vmatprep.subr.bf16.mxu1 %v903_v24 }
  0x80   :  { %1153 = vmatpush3.bf16.msra.mxu0 %v755_v3 }
  0x81   :  { %1154 = vmatprep.subr.bf16.mxu0 %v756_v13 }
  0x82   :  { %1177 = vmatpush3.bf16.msra.mxu1 %v903_v24 }
  0x83   :  { %1123 = vmatmul.mubr.bf16.gmra.mrb[4].mxu0 %v211_v14  ;;  %1178 = vmatprep.subr.bf16.mxu1 %v904_v38 }
  0x84   :  { %1155 = vmatpush3.bf16.msra.mxu0 %v756_v13  ;;  %1166 = vmatprep.mubr.bf16.mxu0 %v750_v15 }
  0x85   :  { %1156 = vmatprep.subr.bf16.mxu0 %v757_v17  ;;  %1147 = vmatmul.mubr.bf16.gmra.mrb[4].mxu1 %v303_v16  ;;  %v1207_v47 = vpop.eup %1206 }
  0x86   :  { %1179 = vmatpush3.bf16.msra.mxu1 %v904_v38  ;;  %v395_v48 = vsub.f32 0.0, %v1207_v47 }
  0x87   :  { %1180 = vmatprep.subr.bf16.mxu1 %v905_v40 }
  0x88   :  { %1157 = vmatpush3.bf16.msra.mxu0 %v757_v17  ;;  %v1734_v50 = vrot.slane %v395_v48, %v400_v49 }
  0x89   :  { %1158 = vmatprep.subr.bf16.mxu0 %v758_v5 }
  0x8a   :  { %1181 = vmatpush3.bf16.msra.mxu1 %v905_v40  ;;  %v433_v53 = vadd.f32 -1e+38, %v1734_v50 }
  0x8b   :  { %1182 = vmatprep.subr.bf16.mxu1 %v906_v41 }
  0x8c   :  { %1159 = vmatpush3.bf16.msra.mxu0 %v758_v5 }
  0x8d   :  { %1160 = vmatprep.subr.bf16.mxu0 %v759_v18 }
  0x8e   :  { %1183 = vmatpush3.bf16.msra.mxu1 %v906_v41 }
  0x8f   :  { %1184 = vmatprep.subr.bf16.mxu1 %v907_v25 }
  0x90   :  { %1161 = vmatpush3.bf16.msra.mxu0 %v759_v18 }
  0x91   :  { %1162 = vmatprep.subr.bf16.mxu0 %v760_v19 }
  0x92   :  { %1185 = vmatpush3.bf16.msra.mxu1 %v907_v25 }
  0x93   :  { %1186 = vmatprep.subr.bf16.mxu1 %v908_v39 }
  0x94   :  { %1163 = vmatpush3.bf16.msra.mxu0 %v760_v19 }
  0x95   :  { %1164 = vmatprep.subr.bf16.mxu0 %v761_v30 }
  0x96   :  { %1187 = vmatpush3.bf16.msra.mxu1 %v908_v39 }
  0x97   :  { %1188 = vmatprep.subr.bf16.mxu1 %v909_v42 }
  0x98   :  { %1165 = vmatpush3.bf16.msra.mxu0 %v761_v30 }
  0x9a   :  { %1189 = vmatpush3.bf16.msra.mxu1 %v909_v42 }
  0x9b   :  { %1167 = vmatmul.mubr.bf16.vlgmr.msra.gmra.mrb[8].mxu0 %v751_v29 }
  0x9c   :  { %1170 = vmatprep.mubr.bf16.mxu0 %v752_v32 }
  0xa3   :  { %1171 = vmatmul.mubr.bf16.gmra.mrb[12].mxu0 %v753_v37 }
 0x14e   :  { %v1120_v52 = vpop.f32.mrb[0].mxu0 }
 0x14f   :  { %v261_v55 = vpop.f32.mrb[1].mxu0  ;;  %v1749_v59 = vadd.f32 %v1120_v52, %v1739_v51 }
 0x150   :  { %v262_v56 = vadd.f32 %v1739_v51, %v261_v55  ;;  %v1121_v57 = vpop.f32.mrb[2].mxu0  ;;  %v1144_v58 = vpop.f32.mrb[0].mxu1 }
 0x151   :  { %v264_v60 = vpop.f32.mrb[3].mxu0  ;;  %v353_v61 = vpop.f32.mrb[1].mxu1  ;;  %v486_v9 = vadd.f32 %v1745_v54, %v1749_v59  ;;  %v1765_v14 = vadd.f32 %v1121_v57, %v1739_v51  ;;  %v1768_v5 = vadd.f32 %v1144_v58, %v1759_v7 }
 0x152   :  { %v414_v62 = vadd.f32 %v1745_v54, %v262_v56  ;;  %v434_v63 = vmax.f32 %v433_v53, %v262_v56  ;;  %v265_v0 = vadd.f32 %v1739_v51, %v264_v60  ;;  %v1753_v1 = vpop.f32.mrb[2].mxu1  ;;  %v1771_v18 = vadd.f32 %v1759_v7, %v353_v61 }
 0x153   :  { %v356_v2 = vpop.f32.mrb[3].mxu1  ;;  %v1788_v37 = vadd.f32 %v1745_v54, %v1765_v14 }
 0x154   :  { %v415_v3 = vmax.f32 %v414_v62, -1e+38  ;;  %v438_v4 = vsub.f32 %v262_v56, %v434_v63  ;;  %v450_v8 = vadd.f32 %v1745_v54, %v265_v0  ;;  %v469_v10 = vadd.f32 %v434_v63, %v1734_v50 }
 0x155   :  { %v435_v12 = vsub.f32 %v433_v53, %v434_v63  ;;  %v1792_v39 = vadd.f32 %v1759_v7, %v356_v2 }
 0x156   :  { %v419_v11 = vsub.f32 %v414_v62, %v415_v3  ;;  %v439_v13 = vmul.f32 1.442695, %v438_v4  ;;  %v451_v15 = vmax.f32 %v434_v63, %v450_v8  ;;  %v470_v16 = vmax.f32 %v469_v10, %v265_v0  ;;  %v1124_v17 = vpop.f32.mrb[4].mxu0 }
 0x157   :  { %v416_v19 = vsub.f32 -1e+38, %v415_v3  ;;  %v1774_v23 = vadd.f32 %v1124_v17, %v1739_v51  ;;  %v277_v26 = vpop.f32.mrb[5].mxu0  ;;  %v1780_v36 = vmul.f32 1.442695, %v435_v12 }
 0x158   :  { %v420_v20 = vmul.f32 1.442695, %v419_v11  ;;  %1208 = vpow2.f32 %v439_v13  ;;  %v1776_v27 = vpop.f32.mrb[4].mxu1  ;;  %v452_v30 = vsub.f32 %v434_v63, %v451_v15  ;;  %v455_v33 = vsub.f32 %v450_v8, %v451_v15  ;;  %v1125_v28 = vpop.f32.mrb[6].mxu0 }
 0x159   :  { %v471_v34 = vsub.f32 %v469_v10, %v470_v16  ;;  %v474_v35 = vsub.f32 %v265_v0, %v470_v16  ;;  %v1778_v29 = vpop.f32.mrb[5].mxu1  ;;  %v505_v31 = vadd.f32 %v470_v16, %v1734_v50  ;;  %v278_v32 = vadd.f32 %v1739_v51, %v277_v26  ;;  %v280_v6 = vpop.f32.mrb[7].mxu0 }
 0x15a   :  { %1210 = vpow2.f32 %v420_v20  ;;  %v1784_v21 = vpop.f32.mrb[6].mxu1  ;;  %v453_v22 = vmul.f32 1.442695, %v452_v30  ;;  %v456_v24 = vmul.f32 1.442695, %v455_v33  ;;  %v1798_v43 = vadd.f32 %v1745_v54, %v1774_v23 }
 0x15b   :  { %v472_v38 = vmul.f32 1.442695, %v471_v34  ;;  %v417_v40 = vmul.f32 1.442695, %v416_v19  ;;  %v475_v41 = vmul.f32 1.442695, %v474_v35  ;;  %v506_v25 = vmax.f32 %v505_v31, %v1749_v59 }
 0x15c   :  { %v1794_v42 = vpop.f32.mrb[7].mxu1  ;;  %1212 = vpow2.f32 %v453_v22  ;;  %v1801_v44 = vadd.f32 %v1739_v51, %v280_v6  ;;  %v487_v45 = vmax.f32 %v470_v16, %v486_v9  ;;  %v558_v48 = vadd.f32 %v1745_v54, %v278_v32 }
 0x15d   :  { %1214 = vpow2.f32 %v456_v24  ;;  %v507_v46 = vsub.f32 %v505_v31, %v506_v25  ;;  %v541_v47 = vadd.f32 %v506_v25, %v1734_v50  ;;  %v510_v53 = vsub.f32 %v1749_v59, %v506_v25 }
 0x15e   :  { %1216 = vpow2.f32 %v472_v38  ;;  %v488_v49 = vsub.f32 %v470_v16, %v487_v45  ;;  %v491_v52 = vsub.f32 %v486_v9, %v487_v45  ;;  %v523_v57 = vmax.f32 %v506_v25, %v1788_v37 }
 0x15f   :  { %1218 = vpow2.f32 %v475_v41  ;;  %v508_v55 = vmul.f32 1.442695, %v507_v46  ;;  %v1807_v56 = vmax.f32 %v541_v47, %v1765_v14  ;;  %v594_v58 = vadd.f32 %v1745_v54, %v1801_v44 }
 0x160   :  { %v489_v60 = vmul.f32 1.442695, %v488_v49  ;;  %v492_v61 = vmul.f32 1.442695, %v491_v52  ;;  %1220 = vpow2.f32 %v417_v40  ;;  %v511_v2 = vmul.f32 1.442695, %v510_v53 }
 0x161   :  { %v543_v63 = vsub.f32 %v541_v47, %v1807_v56  ;;  %v559_v0 = vmax.f32 %v1807_v56, %v558_v48  ;;  %v577_v59 = vadd.f32 %v1807_v56, %v1734_v50  ;;  %1222 = vpow2.f32 %v508_v55 }
 0x162   :  { %v1812_v62 = vpop.eup %1208  ;;  %v524_v4 = vsub.f32 %v506_v25, %v523_v57  ;;  %v527_v8 = vsub.f32 %v1788_v37, %v523_v57  ;;  %1224 = vpow2.f32 %v489_v60  ;;  %v289_v15 = vadd.f32 %v1125_v28, %v1739_v51 }
 0x163   :  { %v1820_v3 = vmul.f32 %v1812_v62, %v1771_v18  ;;  %v560_v10 = vsub.f32 %v1807_v56, %v559_v0  ;;  %v563_v11 = vsub.f32 %v558_v48, %v559_v0  ;;  %v578_v12 = vmax.f32 %v577_v59, %v278_v32 }
 0x164   :  { %v1211_v9 = vpop.eup %1210  ;;  %v1824_v13 = vmul.f32 1.442695, %v543_v63  ;;  %1226 = vpow2.f32 %v492_v61  ;;  %v546_v35 = vsub.f32 %v1765_v14, %v1807_v56  ;;  %v525_v6 = vmul.f32 1.442695, %v524_v4 }
 0x165   :  { %v423_v16 = vmul.f32 %v1211_v9, %v1771_v18  ;;  %v561_v17 = vmul.f32 1.442695, %v560_v10  ;;  %v564_v19 = vmul.f32 1.442695, %v563_v11  ;;  %v579_v20 = vsub.f32 %v577_v59, %v578_v12 }
 0x166   :  { %v582_v26 = vsub.f32 %v278_v32, %v578_v12  ;;  %v1828_v30 = vpop.eup %1212  ;;  %v595_v33 = vmax.f32 %v578_v12, %v594_v58  ;;  %v613_v34 = vadd.f32 %v578_v12, %v1734_v50  ;;  %1228 = vpow2.f32 %v511_v2 }
 0x167   :  { %v1833_v31 = vpop.eup %1214  ;;  %1230 = vpow2.f32 %v561_v17  ;;  %v580_v51 = vmul.f32 1.442695, %v579_v20  ;;  %v528_v38 = vmul.f32 1.442695, %v527_v8  ;;  %v370_v40 = vadd.f32 %v1759_v7, %v1778_v29  ;;  %v1859_v29 = vld [vmem:[%s2065_s9] ss:$0 sm:$0xff] }
 0x168   :  { %v583_v28 = vmul.f32 1.442695, %v582_v26  ;;  %v1835_v18 = vpop.eup %1216  ;;  %1232 = vpow2.f32 %v564_v19  ;;  %v596_v37 = vsub.f32 %v578_v12, %v595_v33  ;;  %v599_v32 = vsub.f32 %v594_v58, %v595_v33 }
 0x169   :  { %v1838_v22 = vmax.f32 %v613_v34, %v1801_v44  ;;  %v1840_v24 = vpop.eup %1218  ;;  %1234 = vpow2.f32 %v580_v51  ;;  %v1844_v14 = vmul.f32 %v1833_v31, %v1792_v39 }
 0x16a   :  { %v1221_v41 = vpop.eup %1220  ;;  %1236 = vpow2.f32 %v583_v28  ;;  %v597_v25 = vmul.f32 1.442695, %v596_v37  ;;  %v600_v45 = vmul.f32 1.442695, %v599_v32  ;;  %v1865_v55 = vmul.f32 %v1840_v24, %v1792_v39 }
 0x16b   :  { %v615_v46 = vsub.f32 %v613_v34, %v1838_v22  ;;  %v618_v47 = vsub.f32 %v1801_v44, %v1838_v22  ;;  %v1853_v48 = vadd.f32 %v1838_v22, %v1734_v50  ;;  %v422_v49 = vmul.f32 0.0, %v1221_v41  ;;  %v1861_v52 = vpop.eup %1222 }
 0x16c   :  { %1238 = vpow2.f32 %v1780_v36  ;;  %v1869_v50 = vmax.f32 %v1838_v22, %v1798_v43  ;;  %v1871_v44 = vpop.eup %1224 }
 0x16d   :  { %1240 = vpow2.f32 %v597_v25  ;;  %v616_v53 = vmul.f32 1.442695, %v615_v46  ;;  %v619_v36 = vmul.f32 1.442695, %v618_v47  ;;  %v1875_v56 = vmax.f32 %v1853_v48, %v1774_v23 }
 0x16e   :  { %1242 = vpow2.f32 %v600_v45  ;;  %v1877_v57 = vadd.f32 %v423_v16, %v422_v49  ;;  %v1168_v58 = vpop.f32.mrb[8].mxu0  ;;  %v1879_v60 = vpop.eup %1226  ;;  %v1881_v39 = vadd.f32 %v1211_v9, %v422_v49  ;;  %v635_v61 = vsub.f32 %v1798_v43, %v1869_v50 }
 0x16f   :  { %1244 = vpow2.f32 %v616_v53  ;;  %v812_v63 = vadd.f32 %v1168_v58, %v1859_v29  ;;  %v803_v0 = vpop.f32.mrb[9].mxu0  ;;  %v1888_v59 = vmul.f32 %v1879_v60, %v1768_v5  ;;  %v654_v2 = vsub.f32 %v1774_v23, %v1875_v56 }
 0x170   :  { %1246 = vpow2.f32 %v619_v36  ;;  %v804_v4 = vadd.f32 %v1859_v29, %v803_v0  ;;  %v1169_v8 = vpop.f32.mrb[10].mxu0  ;;  %v1893_v10 = vpop.eup %1228  ;;  %v666_v9 = vadd.f32 %v1745_v54, %v289_v15  ;;  %v547_v43 = vmul.f32 1.442695, %v546_v35 }
 0x171   :  { %1248 = vrcp.f32 %v1881_v39  ;;  %v636_v11 = vmul.f32 1.442695, %v635_v61  ;;  %v806_v12 = vpop.f32.mrb[11].mxu0  ;;  %v1897_v16 = vpop.eup %1230  ;;  %v1901_v17 = vmul.f32 %v1893_v10, %v1768_v5  ;;  %v1043_v23 = vmul.f32 -1.442695, %v812_v63 }
 0x172   :  { %1250 = vpow2.f32 %v1824_v13  ;;  %v815_v19 = vadd.f32 %v1169_v8, %v1859_v29  ;;  %v1905_v20 = vpop.eup %1232  ;;  %v655_v54 = vmul.f32 1.442695, %v654_v2  ;;  %v1041_v15 = vmul.f32 -1.442695, %v804_v4 }
 0x173   :  { %1252 = vpow2.f32 %v525_v6  ;;  %v667_v26 = vmax.f32 %v1875_v56, %v666_v9  ;;  %v1908_v33 = vpop.eup %1234  ;;  %v1911_v34 = vmul.f32 %v1905_v20, %v370_v40  ;;  %v807_v5 = vadd.f32 %v1859_v29, %v806_v12 }
 0x174   :  { %1254 = vpow2.f32 %v528_v38  ;;  %v632_v13 = vsub.f32 %v1838_v22, %v1869_v50  ;;  %v1916_v35 = vpop.eup %1236  ;;  %v373_v6 = vadd.f32 %v1759_v7, %v1794_v42  ;;  %v1044_v38 = vmul.f32 -1.442695, %v815_v19 }
 0x175   :  { %1256 = vpow2.f32 %v547_v43  ;;  %v668_v51 = vsub.f32 %v1875_v56, %v667_v26  ;;  %v671_v28 = vsub.f32 %v666_v9, %v667_v26  ;;  %v1922_v32 = vmul.f32 %v1916_v35, %v370_v40 }
 0x176   :  { %v1239_v37 = vpop.eup %1238  ;;  %1258 = vpow2.f32 %v636_v11  ;;  %v651_v41 = vsub.f32 %v1853_v48, %v1875_v56  ;;  %v1172_v25 = vpop.f32.mrb[12].mxu0  ;;  %v365_v46 = vadd.f32 %v1753_v1, %v1759_v7  ;;  %v378_v47 = vadd.f32 %v1776_v27, %v1759_v7 }
 0x177   :  { %v1926_v22 = vpop.eup %1240  ;;  %v441_v45 = vmul.f32 0.0, %v1239_v37  ;;  %1260 = vpow2.f32 %v655_v54  ;;  %v819_v42 = vpop.f32.mrb[13].mxu0  ;;  %v1936_v40 = vadd.f32 %v1784_v21, %v1759_v7  ;;  %v669_v48 = vmul.f32 1.442695, %v668_v51 }
 0x178   :  { %v1932_v49 = vpop.eup %1242  ;;  %1262 = vpow2.f32 %v1043_v23  ;;  %v1042_v53 = vmul.f32 -1.442695, %v807_v5  ;;  %v1938_v50 = vpop.f32.mrb[14].mxu0  ;;  %v672_v7 = vmul.f32 1.442695, %v671_v28  ;;  %v828_v63 = vadd.f32 %v1172_v25, %v1859_v29 }
 0x179   :  { %v1940_v36 = vpop.eup %1244  ;;  %v443_v1 = vadd.f32 %v1820_v3, %v441_v45  ;;  %v445_v56 = vadd.f32 %v1812_v62, %v441_v45  ;;  %1264 = vpow2.f32 %v1041_v15  ;;  %v1945_v27 = vmul.f32 %v1932_v49, %v373_v6  ;;  %v1947_v58 = vpop.f32.mrb[15].mxu0 }
 0x17a   :  { %v1949_v61 = vpop.eup %1246  ;;  %1266 = vpow2.f32 %v1044_v38  ;;  %v633_v21 = vmul.f32 1.442695, %v632_v13  ;;  %v1960_v11 = vmul.f32 1.442695, %v651_v41  ;;  %v820_v26 = vadd.f32 %v1859_v29, %v819_v42 }
 0x17b   :  { %v1249_v0 = vpop.eup %1248  ;;  %v461_v2 = vmul.f32 %v1828_v30, %v445_v56  ;;  %v480_v3 = vmul.f32 %v1835_v18, %v445_v56  ;;  %v458_v62 = vmul.f32 %v1828_v30, %v443_v1  ;;  %v477_v4 = vmul.f32 %v1835_v18, %v443_v1 }
 0x17c   :  { %v1251_v8 = vpop.eup %1250  ;;  %v428_v9 = vmul.f32 %v1249_v0, %v1881_v39  ;;  %1268 = vpow2.f32 %v669_v48  ;;  %v1958_v43 = vmul.f32 %v1949_v61, %v373_v6  ;;  %v1047_v39 = vmul.f32 -1.442695, %v828_v63 }
 0x17d   :  { %v1253_v12 = vpop.eup %1252  ;;  %v462_v23 = vadd.f32 %v1833_v31, %v461_v2  ;;  %v481_v19 = vadd.f32 %v1840_v24, %v480_v3  ;;  %v1965_v54 = vadd.f32 %v1844_v14, %v458_v62  ;;  %v479_v30 = vadd.f32 %v1865_v55, %v477_v4 }
 0x17e   :  { %v1255_v18 = vpop.eup %1254  ;;  %v429_v15 = vsub.f32 2.0, %v428_v9  ;;  %1270 = vpow2.f32 %v672_v7  ;;  %v1045_v3 = vmul.f32 -1.442695, %v820_v26 }
 0x17f   :  { %v1257_v5 = vpop.eup %1256  ;;  %1272 = vrcp.f32 %v462_v23  ;;  %v497_v13 = vmul.f32 %v1871_v44, %v481_v19  ;;  %v516_v51 = vmul.f32 %v1861_v52, %v481_v19  ;;  %v531_v31 = vmul.f32 %v1255_v18, %v365_v46 }
 0x180   :  { %v1971_v28 = vpop.eup %1258  ;;  %v430_v24 = vmul.f32 %v1249_v0, %v429_v15  ;;  %v550_v14 = vmul.f32 %v1257_v5, %v365_v46  ;;  %v494_v6 = vmul.f32 %v1871_v44, %v479_v30  ;;  %v513_v55 = vmul.f32 %v1861_v52, %v479_v30 }
 0x181   :  { %v1975_v37 = vpop.eup %1260  ;;  %v498_v38 = vadd.f32 %v1879_v60, %v497_v13  ;;  %v517_v41 = vadd.f32 %v1893_v10, %v516_v51  ;;  %v1980_v25 = vmul.f32 %v1971_v28, %v378_v47  ;;  %1274 = vpow2.f32 %v1042_v53 }
 0x182   :  { %v1263_v45 = vpop.eup %1262  ;;  %v1983_v42 = vmul.f32 %v430_v24, %v1877_v57  ;;  %v1986_v46 = vadd.f32 %v1888_v59, %v494_v6  ;;  %v515_v44 = vadd.f32 %v1901_v17, %v513_v55  ;;  %v1990_v52 = vmul.f32 %v1975_v37, %v378_v47 }
 0x183   :  { %v1265_v48 = vpop.eup %1264  ;;  %1276 = vrcp.f32 %v498_v38  ;;  %v552_v60 = vmul.f32 %v1251_v8, %v517_v41  ;;  %v533_v10 = vmul.f32 %v1253_v12, %v517_v41  ;;  %v860_v1 = vadd.f32 1.0, %v1263_v45 }
 0x184   :  { %v1267_v56 = vpop.eup %1266  ;;  %v530_v7 = vmul.f32 %v1253_v12, %v515_v44  ;;  %v549_v53 = vmul.f32 %v1251_v8, %v515_v44  ;;  %v858_v63 = vadd.f32 1.0, %v1265_v48  ;;  %1278 = vpow2.f32 %v633_v21 }
 0x185   :  { %v534_v57 = vadd.f32 %v1255_v18, %v533_v10  ;;  %v553_v0 = vadd.f32 %v1257_v5, %v552_v60  ;;  %1280 = vrcp.f32 %v860_v1  ;;  %v861_v59 = vadd.f32 1.0, %v1267_v56 }
 0x186   :  { %v1992_v2 = vpop.eup %1268  ;;  %v1994_v17 = vadd.f32 %v531_v31, %v530_v7  ;;  %v551_v47 = vadd.f32 %v550_v14, %v549_v53  ;;  %1282 = vrcp.f32 %v858_v63  ;;  %v831_v8 = vadd.f32 %v1938_v50, %v1859_v29 }
 0x187   :  { %1284 = vrcp.f32 %v534_v57  ;;  %v569_v62 = vmul.f32 %v1897_v16, %v553_v0  ;;  %v588_v4 = vmul.f32 %v1908_v33, %v553_v0  ;;  %v823_v19 = vadd.f32 %v1859_v29, %v1947_v58 }
 0x188   :  { %v2000_v21 = vpop.eup %1270  ;;  %v566_v9 = vmul.f32 %v1897_v16, %v551_v47  ;;  %v585_v12 = vmul.f32 %v1908_v33, %v551_v47  ;;  %1286 = vrcp.f32 %v861_v59  ;;  %v1048_v58 = vmul.f32 -1.442695, %v831_v8 }
 0x189   :  { %v1273_v30 = vpop.eup %1272  ;;  %v570_v18 = vadd.f32 %v1905_v20, %v569_v62  ;;  %v2009_v15 = vmul.f32 %v2000_v21, %v1936_v40  ;;  %v589_v26 = vadd.f32 %v1916_v35, %v588_v4  ;;  %1288 = vpow2.f32 %v1960_v11 }
 0x18a   :  { %v464_v50 = vmul.f32 %v1273_v30, %v462_v23  ;;  %v2014_v16 = vadd.f32 %v1911_v34, %v566_v9  ;;  %v587_v33 = vadd.f32 %v1922_v32, %v585_v12  ;;  %1290 = vpow2.f32 %v1047_v39 }
 0x18b   :  { %v1275_v5 = vpop.eup %1274  ;;  %1292 = vrcp.f32 %v570_v18  ;;  %v605_v29 = vmul.f32 %v1926_v22, %v589_v26  ;;  %v624_v20 = vmul.f32 %v1940_v36, %v589_v26  ;;  %v1046_v51 = vmul.f32 -1.442695, %v823_v19 }
 0x18c   :  { %v465_v40 = vsub.f32 2.0, %v464_v50  ;;  %v859_v13 = vadd.f32 1.0, %v1275_v5  ;;  %v602_v35 = vmul.f32 %v1926_v22, %v587_v33  ;;  %v621_v11 = vmul.f32 %v1940_v36, %v587_v33 }
 0x18d   :  { %v1277_v23 = vpop.eup %1276  ;;  %v606_v34 = vadd.f32 %v1932_v49, %v605_v29  ;;  %1294 = vpow2.f32 %v1045_v3  ;;  %v625_v32 = vadd.f32 %v1949_v61, %v624_v20 }
 0x18e   :  { %v1279_v39 = vpop.eup %1278  ;;  %v466_v31 = vmul.f32 %v1273_v30, %v465_v40  ;;  %v500_v24 = vmul.f32 %v1277_v23, %v498_v38  ;;  %1296 = vrcp.f32 %v859_v13  ;;  %v604_v14 = vadd.f32 %v1945_v27, %v602_v35 }
 0x18f   :  { %v1281_v6 = vpop.eup %1280  ;;  %1298 = vrcp.f32 %v606_v34  ;;  %v623_v55 = vadd.f32 %v1958_v43, %v621_v11  ;;  %v641_v22 = vmul.f32 %v1279_v39, %v625_v32 }
 0x190   :  { %v1283_v41 = vpop.eup %1282  ;;  %v467_v36 = vmul.f32 %v466_v31, %v1965_v54  ;;  %v501_v45 = vsub.f32 2.0, %v500_v24  ;;  %1300 = vpow2.f32 %v1046_v51 }
 0x191   :  { %v1285_v49 = vpop.eup %1284  ;;  %v638_v44 = vmul.f32 %v1279_v39, %v623_v55  ;;  %v890_v61 = vmul.f32 %v1283_v41, %v1983_v42  ;;  %v642_v48 = vadd.f32 %v1971_v28, %v641_v22  ;;  %1302 = vpow2.f32 %v1048_v58 }
 0x192   :  { %v1287_v38 = vpop.eup %1286  ;;  %v502_v60 = vmul.f32 %v1277_v23, %v501_v45  ;;  %v536_v10 = vmul.f32 %v1285_v49, %v534_v57 }
 0x193   :  { %v1289_v27 = vpop.eup %1288  ;;  %v640_v1 = vadd.f32 %v1980_v25, %v638_v44  ;;  %1304 = vrcp.f32 %v642_v48  ;;  %v1049_v44 = vld [vmem:[%s2069_s13] ss:$0 sm:$0xff]  ;;  %s1426_s13 = scalar_lea.vmem %s996_s28, 1024 }
 0x194   :  { %v1291_v43 = vpop.eup %1290  ;;  %v503_v56 = vmul.f32 %v502_v60, %v1986_v46  ;;  %v537_v54 = vsub.f32 2.0, %v536_v10  ;;  %v657_v7 = vmul.f32 %v1289_v27, %v623_v55  ;;  %v660_v53 = vmul.f32 %v1289_v27, %v625_v32  ;;  %p1427_p12 = scmp.ne.s32.totalorder %s996_s28, %s1426_s13  ;;  %p1432_p0 = scmp.lt.s32.totalorder %s1426_s13, %s1426_s13 }
 0x195   :  { %v1293_v63 = vpop.eup %1292  ;;  %v864_v0 = vadd.f32 1.0, %v1291_v43 }
 0x196   :  { %v538_v59 = vmul.f32 %v1285_v49, %v537_v54  ;;  %v572_v42 = vmul.f32 %v1293_v63, %v570_v18  ;;  %v659_v28 = vadd.f32 %v1990_v52, %v657_v7  ;;  %v892_v47 = vmul.f32 %v1281_v6, %v503_v56  ;;  %p1433_p1 = por %p1432_p0, %p1431_p13 }
 0x197   :  { %v1295_v3 = vpop.eup %1294  ;;  %v661_v57 = vadd.f32 %v1975_v37, %v660_v53  ;;  %1306 = vrcp.f32 %v864_v0 }
 0x198   :  { %v1297_v62 = vpop.eup %1296  ;;  %v539_v25 = vmul.f32 %v538_v59, %v1994_v17  ;;  %v573_v4 = vsub.f32 2.0, %v572_v42  ;;  %v674_v8 = vmul.f32 %v1992_v2, %v659_v28  ;;  %v862_v46 = vadd.f32 1.0, %v1295_v3  ;;  %p1434_p2 = pnand %p1433_p1, %p1427_p12 }
 0x199   :  { %v1299_v9 = vpop.eup %1298  ;;  %v891_v12 = vmul.f32 %v1297_v62, %v467_v36  ;;  %v677_v19 = vmul.f32 %v1992_v2, %v661_v57 }
 0x19a   :  { %v574_v30 = vmul.f32 %v1293_v63, %v573_v4  ;;  %v608_v18 = vmul.f32 %v1299_v9, %v606_v34  ;;  %1308 = vrcp.f32 %v862_v46  ;;  %v893_v52 = vmul.f32 %v1287_v38, %v539_v25  ;;  %v1301_v26 = vpop.eup %1300 }
 0x19b   :  { %v898_v50 = vpack.c.bf16 %v891_v12, %v890_v61  ;;  %v676_v37 = vadd.f32 %v2009_v15, %v674_v8  ;;  %v678_v33 = vadd.f32 %v2000_v21, %v677_v19  ;;  %v1303_v17 = vpop.eup %1302  ;;  %v863_v20 = vadd.f32 1.0, %v1301_v26 }
 0x19c   :  { %v575_v5 = vmul.f32 %v574_v30, %v2014_v16  ;;  %v609_v29 = vsub.f32 2.0, %v608_v18  ;;  %v899_v58 = vpack.c.bf16 %v893_v52, %v892_v47  ;;  %v865_v23 = vadd.f32 1.0, %v1303_v17 }
 0x19d   :  { %v1305_v40 = vpop.eup %1304  ;;  %1190 = vmatprep.mubr.bf16.mxu1 %v898_v50  ;;  %1310 = vrcp.f32 %v863_v20 }
 0x19e   :  { %v610_v13 = vmul.f32 %v1299_v9, %v609_v29  ;;  %1191 = vmatmul.mubr.bf16.vlgmr.msra.gmra.mrb[8].mxu1 %v899_v58  ;;  %v644_v2 = vmul.f32 %v1305_v40, %v642_v48  ;;  %1312 = vrcp.f32 %v678_v33 }
 0x19f   :  { %1314 = vrcp.f32 %v865_v23 }
 0x1a0   :  { %v611_v35 = vmul.f32 %v610_v13, %v604_v14  ;;  %v645_v11 = vsub.f32 2.0, %v644_v2 }
 0x1a1   :  { %v1307_v15 = vpop.eup %1306 }
 0x1a2   :  { %v646_v34 = vmul.f32 %v1305_v40, %v645_v11 }
 0x1a4   :  { %v1309_v51 = vpop.eup %1308  ;;  %v647_v21 = vmul.f32 %v646_v34, %v640_v1 }
 0x1a5   :  { %v894_v32 = vmul.f32 %v1309_v51, %v575_v5 }
 0x1a6   :  { %v896_v16 = vmul.f32 %v1307_v15, %v647_v21 }
 0x1a7   :  { %v1311_v39 = vpop.eup %1310 }
 0x1a8   :  { %v1313_v31 = vpop.eup %1312  ;;  %v895_v24 = vmul.f32 %v1311_v39, %v611_v35 }
 0x1a9   :  { %v680_v6 = vmul.f32 %v1313_v31, %v678_v33  ;;  %v1315_v36 = vpop.eup %1314 }
 0x1aa   :  { %v900_v55 = vpack.c.bf16 %v895_v24, %v894_v32 }
 0x1ab   :  { %v681_v22 = vsub.f32 2.0, %v680_v6 }
 0x1ac   :  { %1194 = vmatprep.mubr.bf16.mxu1 %v900_v55 }
 0x1ad   :  { %v682_v41 = vmul.f32 %v1313_v31, %v681_v22 }
 0x1af   :  { %v683_v45 = vmul.f32 %v682_v41, %v676_v37 }
 0x1b1   :  { %v897_v14 = vmul.f32 %v1315_v36, %v683_v45 }
 0x1b3   :  { %v901_v49 = vpack.c.bf16 %v897_v14, %v896_v16 }
 0x1b5   :  { %1195 = vmatmul.mubr.bf16.gmra.mrb[12].mxu1 %v901_v49 }
 0x271   :  { %v1192_v61 = vpop.f32.mrb[8].mxu1 }
 0x272   :  { %v960_v48 = vadd.f32 %v1192_v61, %v1049_v44  ;;  %v951_v38 = vpop.f32.mrb[9].mxu1 }
 0x273   :  { %v952_v60 = vadd.f32 %v1049_v44, %v951_v38  ;;  %v1193_v10 = vpop.f32.mrb[10].mxu1 }
 0x274   :  { %984 = vst [vmem:[#allocation16 + $0x10] sm:$0xff] %v960_v48  ;;  %v963_v27 = vadd.f32 %v1193_v10, %v1049_v44  ;;  %v954_v1 = vpop.f32.mrb[11].mxu1 }
 0x275   :  { %982 = vst [vmem:[#allocation16] sm:$0xff] %v952_v60  ;;  %v955_v43 = vadd.f32 %v1049_v44, %v954_v1 }
 0x276   :  { %985 = vst [vmem:[#allocation16 + $0x18] sm:$0xff] %v963_v27 }
 0x277   :  { %983 = vst [vmem:[#allocation16 + $0x8] sm:$0xff] %v955_v43 }
 0x288   :  { %v1196_v56 = vpop.f32.mrb[12].mxu1 }
 0x289   :  { %v976_v54 = vadd.f32 %v1196_v56, %v1049_v44  ;;  %v967_v7 = vpop.f32.mrb[13].mxu1 }
 0x28a   :  { %v968_v53 = vadd.f32 %v1049_v44, %v967_v7  ;;  %v1197_v63 = vpop.f32.mrb[14].mxu1 }
 0x28b   :  { %988 = vst [vmem:[#allocation16 + $0x30] sm:$0xff] %v976_v54  ;;  %v979_v0 = vadd.f32 %v1197_v63, %v1049_v44  ;;  %v970_v59 = vpop.f32.mrb[15].mxu1 }
 0x28c   :  { %986 = vst [vmem:[#allocation16 + $0x20] sm:$0xff] %v968_v53  ;;  %v971_v42 = vadd.f32 %v1049_v44, %v970_v59 }
 0x28d   :  { %989 = vst [vmem:[#allocation16 + $0x38] sm:$0xff] %v979_v0 }
 0x28e   :  { %987 = vst [vmem:[#allocation16 + $0x28] sm:$0xff] %v971_v42 }
 0x28f   :  { %1437 = shalt.err (!%p1434_p2)
}
 0x290   :  { %s1438_s25 = scalar_lea.hbm %s2070_s14, 1024 }
 0x291   :  { %p1439_p3 = scmp.ne.s32.totalorder %s2070_s14, %s1438_s25  ;;  %p1442_p4 = scmp.lt.u32.totalorder %s1438_s25, %s2070_s14 }
 0x293   :  { %p1444_p5 = pnand %p1442_p4, %p1439_p3 }
 0x295   :  { %1447 = shalt.err (!%p1444_p5)
}
 0x296   :  { %1001 = dma.vmem_to_hbm [thread:$0]  %s996_s28, 1024, %s2070_s14, [#allocation15], %s1461_s23, %s1461_s23, %s1462_s24  }
 0x297   :  { %1458 = dma.done.wait [#allocation15], 1024  }
 0x298   :  { %1459 = vsyncadd [#allocation15], 4294966272 }
 0x299   :  { %1005 = vsyncpa [#allocation14], 1 }
 0x29a   :  { %1006 = vsyncpa [#allocation15], 1 }
 0x29b   :  { %1007 = vsyncmov [#allocation6] }
 0x29e   :  { %s1008_s1 = vpop.sfrf %1007 }
 0x29f   :  { %p1050_p6 = scmp.ne.s32.totalorder %s1008_s1, 0 }
 0x2a1   :  { %1012 = shalt.err (%p1050_p6)  }
 0x2a2   :  { %1014 = vsyncmov [#allocation6 + $0x1] }
 0x2a5   :  { %s1015_s29 = vpop.sfrf %1014 }
 0x2a6   :  { %p1051_p7 = scmp.ne.s32.totalorder %s1015_s29, 0 }
 0x2a8   :  { %1019 = shalt.err (%p1051_p7)  }
 0x2a9   :  { %1021 = vsyncmov [#allocation6 + $0x2] }
 0x2ac   :  { %s1022_s2 = vpop.sfrf %1021 }
 0x2ad   :  { %p1052_p8 = scmp.ne.s32.totalorder %s1022_s2, 0 }
 0x2af   :  { %1026 = shalt.err (%p1052_p8)  }
 0x2b0   :  { %1028 = vsyncmov [#allocation6 + $0x3] }
 0x2b3   :  { %s1029_s16 = vpop.sfrf %1028 }
 0x2b4   :  { %p1053_p9 = scmp.ne.s32.totalorder %s1029_s16, 0 }
 0x2b6   :  { %1033 = shalt.err (%p1053_p9)  }

</bundles_post_ra>
